<compile_context>
chip_gen: v7x
topology: tpu7x:2x2x1
jax: 0.10.0
libtpu: 0.0.40
codegen_flags: <defaults>
</compile_context>

<pallas_src>
import functools

import jax
import jax.numpy as jnp
from jax.experimental import pallas as pl
from jax.experimental.pallas import tpu as pltpu

NEG_SLOPE = 0.01          # F.leaky_relu default
BN_EPS = 1e-5             # BatchNorm1d default
NEG_PAD = -1e30           # bias for padded class lanes (vanishes in log_softmax)

TM = 128                  # node-row tile (works on v5e/v6e/v7x; could be 256-512 on v6e)
TK = 128                  # A_hat column (reduction) tile
LANE = 128
VMEM_LIMIT = 32 * 1024 * 1024


def _ceil_to(v, m):
    return (v + m - 1) // m * m


def _pad2d(a, rows, cols, value=0.0):
    r, c = a.shape
    return jnp.pad(a, ((0, rows - r), (0, cols - c)), constant_values=value)


# ----------------------------------------------------------------------------- 
# Kernel 1: per node-row tile
#   h_act = leaky_relu(x @ W1 + b1)                     (bn1 folded forward)
#   hw    = bn1(h_act) @ Wc = h_act @ (s1*Wc) + t1 @ Wc  (pre-aggregation messages)
# -----------------------------------------------------------------------------
def feat_kernel(x_ref, w1_ref, b1_ref, wc_ref, bhw_ref, h_ref, hw_ref):
    h = jnp.dot(x_ref[...], w1_ref[...],
                preferred_element_type=jnp.float32) + b1_ref[...]
    h = jnp.where(h >= 0, h, NEG_SLOPE * h)              # leaky_relu (f32 VPU)
    h_ref[...] = h.astype(h_ref.dtype)
    hw = jnp.dot(h.astype(wc_ref.dtype), wc_ref[...],
                 preferred_element_type=jnp.float32) + bhw_ref[...]
    hw_ref[...] = hw.astype(hw_ref.dtype)


# -----------------------------------------------------------------------------
# Kernel 2: grid (row_tiles, k_tiles); reduction over A_hat column tiles.
#   acc  += A_hat[i, k] @ hw[k]
#   tail (at last k):
#     g      = leaky_relu(acc + bc)
#     logits = h_act @ (s1*W2a) + g @ (s2*W2b) + b2_fold     (== cat@W2+b2 w/ BN)
#     out    = log_softmax(logits)
# -----------------------------------------------------------------------------
def agg_kernel(a_ref, hw_ref, h_ref, bc_ref, w2a_ref, w2b_ref, b2_ref,
               out_ref, acc_ref):
    k = pl.program_id(1)

    @pl.when(k == 0)
    def _():
        acc_ref[...] = jnp.zeros_like(acc_ref)

    acc_ref[...] += jnp.dot(a_ref[...], hw_ref[...],
                            preferred_element_type=jnp.float32)

    @pl.when(k == pl.num_programs(1) - 1)
    def _():
        g = acc_ref[...] + bc_ref[...]
        g = jnp.where(g >= 0, g, NEG_SLOPE * g)          # act on conv output
        logits = (jnp.dot(h_ref[...], w2a_ref[...],
                          preferred_element_type=jnp.float32)
                  + jnp.dot(g.astype(w2b_ref.dtype), w2b_ref[...],
                            preferred_element_type=jnp.float32)
                  + b2_ref[...])
        mx = jnp.max(logits, axis=-1, keepdims=True)
        z = logits - mx
        lse = jnp.log(jnp.sum(jnp.exp(z), axis=-1, keepdims=True))
        out_ref[...] = z - lse


def gcn_forward(x, a_hat, params, *, num_class):
    """Fused, tiled GCN forward. params: dict of 2-D f32 arrays (see build_params)."""
    n, f = x.shape
    h_dim = params["w1"].shape[1]
    h2_dim = params["wc"].shape[1]

    # ---- Fold BatchNorm (eval, running stats) into adjacent matmuls -----------
    s1 = params["bn1_g"] * jax.lax.rsqrt(params["bn1_v"] + BN_EPS)      # [1,H]
    t1 = params["bn1_b"] - params["bn1_m"] * s1
    s2 = params["bn2_g"] * jax.lax.rsqrt(params["bn2_v"] + BN_EPS)      # [1,H2]
    t2 = params["bn2_b"] - params["bn2_m"] * s2

    wc_f = params["wc"] * s1.T                    # diag(s1) @ Wc
    bhw = t1 @ params["wc"]                       # bn1 shift folded into hw bias
    w2a_f = params["w2a"] * s1.T                  # diag(s1) @ W2a
    w2b_f = params["w2b"] * s2.T                  # diag(s2) @ W2b
    b2_f = params["b2"] + t1 @ params["w2a"] + t2 @ params["w2b"]

    # ---- Pad node axis to TM/TK multiples, lane axes to 128 multiples ---------
    n_p = max(_ceil_to(n, max(TM, TK)), max(TM, TK))
    f_p = _ceil_to(f, LANE)
    h_p = _ceil_to(h_dim, LANE)
    h2_p = _ceil_to(h2_dim, LANE)
    c_p = _ceil_to(num_class, LANE)

    bf16 = jnp.bfloat16
    x_p = _pad2d(x, n_p, f_p).astype(bf16)
    a_p = _pad2d(a_hat, n_p, n_p).astype(bf16)
    w1_p = _pad2d(params["w1"], f_p, h_p).astype(bf16)
    b1_p = _pad2d(params["b1"], 1, h_p)                    # f32
    wc_p = _pad2d(wc_f, h_p, h2_p).astype(bf16)
    bhw_p = _pad2d(bhw, 1, h2_p)                           # f32
    bc_p = _pad2d(params["bc"], 1, h2_p)                   # f32
    w2a_p = _pad2d(w2a_f, h_p, c_p).astype(bf16)
    w2b_p = _pad2d(w2b_f, h2_p, c_p).astype(bf16)
    b2_p = _pad2d(b2_f, 1, c_p, value=NEG_PAD)             # f32, pads -> -1e30

    grid_rows = n_p // TM
    grid_k = n_p // TK

    # ---- Kernel 1: per-node feature transform (row tiled, "parallel") ---------
    # Weight/bias specs use a constant index_map so they stay VMEM-resident.
    # TODO(synk): could add pipeline_mode=pl.Buffered(1) on grid-invariant
    # operands to skip double-buffering them; left at default for portability.
    h_act, hw = pl.pallas_call(
        feat_kernel,
        out_shape=(jax.ShapeDtypeStruct((n_p, h_p), bf16),
                   jax.ShapeDtypeStruct((n_p, h2_p), bf16)),
        grid=(grid_rows,),
        in_specs=[
            pl.BlockSpec((TM, f_p), lambda i: (i, 0)),     # x row tile
            pl.BlockSpec((f_p, h_p), lambda i: (0, 0)),    # W1
            pl.BlockSpec((1, h_p), lambda i: (0, 0)),      # b1
            pl.BlockSpec((h_p, h2_p), lambda i: (0, 0)),   # Wc (bn1-scaled)
            pl.BlockSpec((1, h2_p), lambda i: (0, 0)),     # t1 @ Wc
        ],
        out_specs=(pl.BlockSpec((TM, h_p), lambda i: (i, 0)),
                   pl.BlockSpec((TM, h2_p), lambda i: (i, 0))),
        compiler_params=pltpu.CompilerParams(
            dimension_semantics=("parallel",),
            vmem_limit_bytes=VMEM_LIMIT),
    )(x_p, w1_p, b1_p, wc_p, bhw_p)

    # ---- Kernel 2: tiled aggregation + classifier tail -------------------------
    out_p = pl.pallas_call(
        agg_kernel,
        out_shape=jax.ShapeDtypeStruct((n_p, c_p), jnp.float32),
        grid=(grid_rows, grid_k),
        in_specs=[
            pl.BlockSpec((TM, TK), lambda i, k: (i, k)),     # A_hat tile
            pl.BlockSpec((TK, h2_p), lambda i, k: (k, 0)),   # hw column-block rows
            pl.BlockSpec((TM, h_p), lambda i, k: (i, 0)),    # h_act row tile
            pl.BlockSpec((1, h2_p), lambda i, k: (0, 0)),    # bc
            pl.BlockSpec((h_p, c_p), lambda i, k: (0, 0)),   # W2a (bn1-scaled)
            pl.BlockSpec((h2_p, c_p), lambda i, k: (0, 0)),  # W2b (bn2-scaled)
            pl.BlockSpec((1, c_p), lambda i, k: (0, 0)),     # b2 (folded, pad=-1e30)
        ],
        out_specs=pl.BlockSpec((TM, c_p), lambda i, k: (i, 0)),
        scratch_shapes=[pltpu.VMEM((TM, h2_p), jnp.float32)],
        compiler_params=pltpu.CompilerParams(
            dimension_semantics=("parallel", "arbitrary"),
            vmem_limit_bytes=VMEM_LIMIT),
    )(a_p, hw, h_act, bc_p, w2a_p, w2b_p, b2_p)

    return out_p[:n, :num_class]


def build_norm_adj(edge_index, edge_weight, num_nodes):
    """Dense D^{-1/2}(A + I)D^{-1/2}, matching PyG GCNConv gcn_norm (add_self_loops).

    Graph preprocessing (scatter / index manipulation) stays in plain JAX glue.
    TODO(synk): for realistic sparse graphs, replace the dense A_hat with a
    CSR/block-sparse gather via PrefetchScalarGridSpec instead of O(N^2) dense.
    """
    row, col = edge_index[0], edge_index[1]          # source -> target
    loop = jnp.arange(num_nodes, dtype=row.dtype)
    row = jnp.concatenate([row, loop])
    col = jnp.concatenate([col, loop])
    w = jnp.concatenate(
        [edge_weight, jnp.ones((num_nodes,), dtype=edge_weight.dtype)])
    deg = jnp.zeros((num_nodes,), jnp.float32).at[col].add(w)
    dinv = jnp.where(deg > 0, 1.0 / jnp.sqrt(deg), 0.0)
    norm = dinv[row] * w * dinv[col]
    # A_hat[i, j] = normalized weight of edge j -> i
    a_hat = jnp.zeros((num_nodes, num_nodes), jnp.float32).at[col, row].add(norm)
    return a_hat


def build_params(key, features_num, hidden, hidden2, num_class):
    """Deterministic parameter init (PyTorch Linear-style uniform bounds).

    Linear weights stored transposed as [in, out]; biases / BN params as [1, F].
    """
    ks = jax.random.split(key, 12)
    u = lambda k, shape, bound: jax.random.uniform(
        k, shape, jnp.float32, minval=-bound, maxval=bound)

    p = {}
    # first_lin: Linear(features_num, hidden)
    b = 1.0 / jnp.sqrt(features_num)
    p["w1"] = u(ks[0], (features_num, hidden), b)
    p["b1"] = u(ks[1], (1, hidden), b)
    # bn1 (nontrivial deterministic running stats to exercise the BN folding)
    p["bn1_g"] = 1.0 + 0.1 * u(ks[2], (1, hidden), 1.0)
    p["bn1_b"] = 0.1 * u(ks[3], (1, hidden), 1.0)
    p["bn1_m"] = 0.1 * u(ks[4], (1, hidden), 1.0)
    p["bn1_v"] = 1.0 + 0.5 * jax.random.uniform(ks[5], (1, hidden), jnp.float32)
    # GCNConv(hidden, hidden2): weight [hidden, hidden2], bias [hidden2]
    b = 1.0 / jnp.sqrt(hidden)
    p["wc"] = u(ks[6], (hidden, hidden2), b)
    p["bc"] = u(ks[7], (1, hidden2), b)
    # bn2
    p["bn2_g"] = 1.0 + 0.1 * u(ks[8], (1, hidden2), 1.0)
    p["bn2_b"] = 0.1 * u(ks[9], (1, hidden2), 1.0)
    p["bn2_m"] = 0.1 * u(ks[10], (1, hidden2), 1.0)
    p["bn2_v"] = 1.0 + 0.5 * jax.random.uniform(ks[11], (1, hidden2), jnp.float32)
    # lin2: Linear(hidden + hidden2, num_class), split along the input axis
    kk = jax.random.split(jax.random.fold_in(key, 99), 2)
    b = 1.0 / jnp.sqrt(hidden + hidden2)
    w2 = u(kk[0], (hidden + hidden2, num_class), b)
    p["w2a"] = w2[:hidden]
    p["w2b"] = w2[hidden:]
    p["b2"] = u(kk[1], (1, num_class), b)
    return p


if __name__ == "__main__":
    # Small, TPU-friendly shapes consistent with the module defaults
    # (num_layers=2, hidden=64, hidden2=32, agg='concat', act='leaky_relu', withbn=True).
    # N=256 exercises 2 row tiles and 2 reduction tiles.
    N = 256             # number of graph nodes
    FEATURES = 32       # features_num
    HIDDEN = 64         # hidden
    HIDDEN2 = 32        # hidden2
    NUM_CLASS = 8       # num_class
    NUM_EDGES = 1024

    key = jax.random.PRNGKey(0)
    k_x, k_src, k_dst, k_w, k_p = jax.random.split(key, 5)

    x = jax.random.normal(k_x, (N, FEATURES), jnp.float32)
    edge_index = jnp.stack([
        jax.random.randint(k_src, (NUM_EDGES,), 0, N),
        jax.random.randint(k_dst, (NUM_EDGES,), 0, N),
    ])
    edge_weight = jax.random.uniform(k_w, (NUM_EDGES,), jnp.float32,
                                     minval=0.5, maxval=1.5)

    a_hat = build_norm_adj(edge_index, edge_weight, N)
    params = build_params(k_p, FEATURES, HIDDEN, HIDDEN2, NUM_CLASS)

    fwd = jax.jit(functools.partial(gcn_forward, num_class=NUM_CLASS))
    out = jax.block_until_ready(fwd(x, a_hat, params))

    assert out.shape == (N, NUM_CLASS)
    assert bool(jnp.all(jnp.isfinite(out)))
    # log_softmax sanity: rows exponentiate to (approximately) a probability dist.
    probs = jnp.exp(out)
    assert bool(jnp.allclose(jnp.sum(probs, axis=-1), 1.0, atol=1e-3))
    print("KERNEL_OK")
</pallas_src>

<mosaic_0001>
module attributes {stable_mosaic.version = 11 : i64} {
  func.func @feat_kernel(%arg0: i32, %arg1: memref<128x128xbf16, #tpu.memory_space<vmem>>, %arg2: memref<128x128xbf16, #tpu.memory_space<vmem>>, %arg3: memref<1x128xf32, #tpu.memory_space<vmem>>, %arg4: memref<128x128xbf16, #tpu.memory_space<vmem>>, %arg5: memref<1x128xf32, #tpu.memory_space<vmem>>, %arg6: memref<128x128xbf16, #tpu.memory_space<vmem>>, %arg7: memref<128x128xbf16, #tpu.memory_space<vmem>>) attributes {dimension_semantics = [#tpu.dimension_semantics<parallel>], iteration_bounds = array<i64: 2>, scalar_prefetch = 0 : i64, scratch_operands = 0 : i64, tpu.core_type = #tpu.core_type<tc>, window_params = [{transform_indices = @transform_0, window_bounds = array<i64: 128, 128>}, {pipeline_mode = #tpu.pipeline_mode<synchronous>, transform_indices = @transform_1, window_bounds = array<i64: 128, 128>}, {pipeline_mode = #tpu.pipeline_mode<synchronous>, transform_indices = @transform_2, window_bounds = array<i64: 1, 128>}, {pipeline_mode = #tpu.pipeline_mode<synchronous>, transform_indices = @transform_3, window_bounds = array<i64: 128, 128>}, {pipeline_mode = #tpu.pipeline_mode<synchronous>, transform_indices = @transform_4, window_bounds = array<i64: 1, 128>}, {transform_indices = @transform_5, window_bounds = array<i64: 128, 128>}, {transform_indices = @transform_6, window_bounds = array<i64: 128, 128>}]} {
    %c0 = arith.constant 0 : index
    %c0_0 = arith.constant 0 : index
    %0 = vector.load %arg1[%c0, %c0_0] : memref<128x128xbf16, #tpu.memory_space<vmem>>, vector<128x128xbf16>
    %c0_1 = arith.constant 0 : index
    %c0_2 = arith.constant 0 : index
    %1 = vector.load %arg2[%c0_1, %c0_2] : memref<128x128xbf16, #tpu.memory_space<vmem>>, vector<128x128xbf16>
    %cst = arith.constant dense<0.000000e+00> : vector<128x128xf32>
    %2 = tpu.matmul %0, %1, %cst {dimension_numbers = #tpu.dot_dimension_numbers<[1], [0], [0], [1], [0, 0, 1, 1], [], []>} : vector<128x128xbf16>, vector<128x128xbf16>, vector<128x128xf32> -> vector<128x128xf32>
    %c0_3 = arith.constant 0 : index
    %c0_4 = arith.constant 0 : index
    %3 = vector.load %arg3[%c0_3, %c0_4] : memref<1x128xf32, #tpu.memory_space<vmem>>, vector<1x128xf32>
    %4 = vector.broadcast %3 : vector<1x128xf32> to vector<128x128xf32>
    %5 = arith.addf %2, %4 : vector<128x128xf32>
    %cst_5 = arith.constant 0.000000e+00 : f32
    %6 = vector.broadcast %cst_5 : f32 to vector<128x128xf32>
    %7 = arith.cmpf oge, %5, %6 : vector<128x128xf32>
    %cst_6 = arith.constant 0.00999999977 : f32
    %8 = vector.broadcast %cst_6 : f32 to vector<128x128xf32>
    %9 = arith.mulf %8, %5 : vector<128x128xf32>
    %10 = arith.select %7, %5, %9 : vector<128x128xi1>, vector<128x128xf32>
    %11 = arith.truncf %10 : vector<128x128xf32> to vector<128x128xbf16>
    %c0_7 = arith.constant 0 : index
    %c0_8 = arith.constant 0 : index
    %12 = vector.load %arg6[%c0_7, %c0_8] : memref<128x128xbf16, #tpu.memory_space<vmem>>, vector<128x128xbf16>
    tpu.vector_store %arg6[%c0_7, %c0_8], %11 {strides = array<i32>} : memref<128x128xbf16, #tpu.memory_space<vmem>>, vector<128x128xbf16>,
    %13 = arith.truncf %10 : vector<128x128xf32> to vector<128x128xbf16>
    %c0_9 = arith.constant 0 : index
    %c0_10 = arith.constant 0 : index
    %14 = vector.load %arg4[%c0_9, %c0_10] : memref<128x128xbf16, #tpu.memory_space<vmem>>, vector<128x128xbf16>
    %cst_11 = arith.constant dense<0.000000e+00> : vector<128x128xf32>
    %15 = tpu.matmul %13, %14, %cst_11 {dimension_numbers = #tpu.dot_dimension_numbers<[1], [0], [0], [1], [0, 0, 1, 1], [], []>} : vector<128x128xbf16>, vector<128x128xbf16>, vector<128x128xf32> -> vector<128x128xf32>
    %c0_12 = arith.constant 0 : index
    %c0_13 = arith.constant 0 : index
    %16 = vector.load %arg5[%c0_12, %c0_13] : memref<1x128xf32, #tpu.memory_space<vmem>>, vector<1x128xf32>
    %17 = vector.broadcast %16 : vector<1x128xf32> to vector<128x128xf32>
    %18 = arith.addf %15, %17 : vector<128x128xf32>
    %19 = arith.truncf %18 : vector<128x128xf32> to vector<128x128xbf16>
    %c0_14 = arith.constant 0 : index
    %c0_15 = arith.constant 0 : index
    %20 = vector.load %arg7[%c0_14, %c0_15] : memref<128x128xbf16, #tpu.memory_space<vmem>>, vector<128x128xbf16>
    tpu.vector_store %arg7[%c0_14, %c0_15], %19 {strides = array<i32>} : memref<128x128xbf16, #tpu.memory_space<vmem>>, vector<128x128xbf16>,
    return
  }
  func.func @transform_0(%arg0: i32) -> (i32, i32) {
    %c0_i32 = arith.constant 0 : i32
    %c0_i32_0 = arith.constant 0 : i32
    return %arg0, %c0_i32 : i32, i32
  }
  func.func @transform_1(%arg0: i32) -> (i32, i32) {
    %c0_i32 = arith.constant 0 : i32
    %c0_i32_0 = arith.constant 0 : i32
    %c0_i32_1 = arith.constant 0 : i32
    return %c0_i32, %c0_i32_0 : i32, i32
  }
  func.func @transform_2(%arg0: i32) -> (i32, i32) {
    %c0_i32 = arith.constant 0 : i32
    %c0_i32_0 = arith.constant 0 : i32
    %c0_i32_1 = arith.constant 0 : i32
    return %c0_i32, %c0_i32_0 : i32, i32
  }
  func.func @transform_3(%arg0: i32) -> (i32, i32) {
    %c0_i32 = arith.constant 0 : i32
    %c0_i32_0 = arith.constant 0 : i32
    %c0_i32_1 = arith.constant 0 : i32
    return %c0_i32, %c0_i32_0 : i32, i32
  }
  func.func @transform_4(%arg0: i32) -> (i32, i32) {
    %c0_i32 = arith.constant 0 : i32
    %c0_i32_0 = arith.constant 0 : i32
    %c0_i32_1 = arith.constant 0 : i32
    return %c0_i32, %c0_i32_0 : i32, i32
  }
  func.func @transform_5(%arg0: i32) -> (i32, i32) {
    %c0_i32 = arith.constant 0 : i32
    %c0_i32_0 = arith.constant 0 : i32
    return %arg0, %c0_i32 : i32, i32
  }
  func.func @transform_6(%arg0: i32) -> (i32, i32) {
    %c0_i32 = arith.constant 0 : i32
    %c0_i32_0 = arith.constant 0 : i32
    return %arg0, %c0_i32 : i32, i32
  }
}

module attributes {stable_mosaic.version = 11 : i64} {
  func.func @agg_kernel(%arg0: i32, %arg1: i32, %arg2: memref<128x128xbf16, #tpu.memory_space<vmem>>, %arg3: memref<128x128xbf16, #tpu.memory_space<vmem>>, %arg4: memref<128x128xbf16, #tpu.memory_space<vmem>>, %arg5: memref<1x128xf32, #tpu.memory_space<vmem>>, %arg6: memref<128x128xbf16, #tpu.memory_space<vmem>>, %arg7: memref<128x128xbf16, #tpu.memory_space<vmem>>, %arg8: memref<1x128xf32, #tpu.memory_space<vmem>>, %arg9: memref<128x128xf32, #tpu.memory_space<vmem>>, %arg10: memref<128x128xf32, #tpu.memory_space<vmem>>) attributes {dimension_semantics = [#tpu.dimension_semantics<parallel>, #tpu.dimension_semantics<arbitrary>], iteration_bounds = array<i64: 2, 2>, scalar_prefetch = 0 : i64, scratch_operands = 1 : i64, tpu.core_type = #tpu.core_type<tc>, window_params = [{transform_indices = @transform_0, window_bounds = array<i64: 128, 128>}, {transform_indices = @transform_1, window_bounds = array<i64: 128, 128>}, {transform_indices = @transform_2, window_bounds = array<i64: 128, 128>}, {pipeline_mode = #tpu.pipeline_mode<synchronous>, transform_indices = @transform_3, window_bounds = array<i64: 1, 128>}, {pipeline_mode = #tpu.pipeline_mode<synchronous>, transform_indices = @transform_4, window_bounds = array<i64: 128, 128>}, {pipeline_mode = #tpu.pipeline_mode<synchronous>, transform_indices = @transform_5, window_bounds = array<i64: 128, 128>}, {pipeline_mode = #tpu.pipeline_mode<synchronous>, transform_indices = @transform_6, window_bounds = array<i64: 1, 128>}, {transform_indices = @transform_7, window_bounds = array<i64: 128, 128>}]} {
    %c0_i32 = arith.constant 0 : i32
    %0 = arith.cmpi eq, %arg1, %c0_i32 : i32
    %1 = arith.extui %0 : i1 to i32
    %c0_i32_0 = arith.constant 0 : i32
    %2 = arith.cmpi ne, %1, %c0_i32_0 : i32
    scf.if %2 {
      %cst_9 = arith.constant 0.000000e+00 : f32
      %12 = vector.broadcast %cst_9 : f32 to vector<128x128xf32>
      %c0_10 = arith.constant 0 : index
      %c0_11 = arith.constant 0 : index
      %13 = vector.load %arg10[%c0_10, %c0_11] : memref<128x128xf32, #tpu.memory_space<vmem>>, vector<128x128xf32>
      tpu.vector_store %arg10[%c0_10, %c0_11], %12 {strides = array<i32>} : memref<128x128xf32, #tpu.memory_space<vmem>>, vector<128x128xf32>,
    } else {
    }
    %c0 = arith.constant 0 : index
    %c0_1 = arith.constant 0 : index
    %3 = vector.load %arg10[%c0, %c0_1] : memref<128x128xf32, #tpu.memory_space<vmem>>, vector<128x128xf32>
    %c0_2 = arith.constant 0 : index
    %c0_3 = arith.constant 0 : index
    %4 = vector.load %arg2[%c0_2, %c0_3] : memref<128x128xbf16, #tpu.memory_space<vmem>>, vector<128x128xbf16>
    %c0_4 = arith.constant 0 : index
    %c0_5 = arith.constant 0 : index
    %5 = vector.load %arg3[%c0_4, %c0_5] : memref<128x128xbf16, #tpu.memory_space<vmem>>, vector<128x128xbf16>
    %cst = arith.constant dense<0.000000e+00> : vector<128x128xf32>
    %6 = tpu.matmul %4, %5, %cst {dimension_numbers = #tpu.dot_dimension_numbers<[1], [0], [0], [1], [0, 0, 1, 1], [], []>} : vector<128x128xbf16>, vector<128x128xbf16>, vector<128x128xf32> -> vector<128x128xf32>
    %7 = arith.addf %3, %6 : vector<128x128xf32>
    %c0_6 = arith.constant 0 : index
    %c0_7 = arith.constant 0 : index
    %8 = vector.load %arg10[%c0_6, %c0_7] : memref<128x128xf32, #tpu.memory_space<vmem>>, vector<128x128xf32>
    tpu.vector_store %arg10[%c0_6, %c0_7], %7 {strides = array<i32>} : memref<128x128xf32, #tpu.memory_space<vmem>>, vector<128x128xf32>,
    %c1_i32 = arith.constant 1 : i32
    %9 = arith.cmpi eq, %arg1, %c1_i32 : i32
    %10 = arith.extui %9 : i1 to i32
    %c0_i32_8 = arith.constant 0 : i32
    %11 = arith.cmpi ne, %10, %c0_i32_8 : i32
    scf.if %11 {
      %c0_9 = arith.constant 0 : index
      %c0_10 = arith.constant 0 : index
      %12 = vector.load %arg10[%c0_9, %c0_10] : memref<128x128xf32, #tpu.memory_space<vmem>>, vector<128x128xf32>
      %c0_11 = arith.constant 0 : index
      %c0_12 = arith.constant 0 : index
      %13 = vector.load %arg5[%c0_11, %c0_12] : memref<1x128xf32, #tpu.memory_space<vmem>>, vector<1x128xf32>
      %14 = vector.broadcast %13 : vector<1x128xf32> to vector<128x128xf32>
      %15 = arith.addf %12, %14 : vector<128x128xf32>
      %cst_13 = arith.constant 0.000000e+00 : f32
      %16 = vector.broadcast %cst_13 : f32 to vector<128x128xf32>
      %17 = arith.cmpf oge, %15, %16 : vector<128x128xf32>
      %cst_14 = arith.constant 0.00999999977 : f32
      %18 = vector.broadcast %cst_14 : f32 to vector<128x128xf32>
      %19 = arith.mulf %18, %15 : vector<128x128xf32>
      %20 = arith.select %17, %15, %19 : vector<128x128xi1>, vector<128x128xf32>
      %c0_15 = arith.constant 0 : index
      %c0_16 = arith.constant 0 : index
      %21 = vector.load %arg4[%c0_15, %c0_16] : memref<128x128xbf16, #tpu.memory_space<vmem>>, vector<128x128xbf16>
      %c0_17 = arith.constant 0 : index
      %c0_18 = arith.constant 0 : index
      %22 = vector.load %arg6[%c0_17, %c0_18] : memref<128x128xbf16, #tpu.memory_space<vmem>>, vector<128x128xbf16>
      %cst_19 = arith.constant dense<0.000000e+00> : vector<128x128xf32>
      %23 = tpu.matmul %21, %22, %cst_19 {dimension_numbers = #tpu.dot_dimension_numbers<[1], [0], [0], [1], [0, 0, 1, 1], [], []>} : vector<128x128xbf16>, vector<128x128xbf16>, vector<128x128xf32> -> vector<128x128xf32>
      %24 = arith.truncf %20 : vector<128x128xf32> to vector<128x128xbf16>
      %c0_20 = arith.constant 0 : index
      %c0_21 = arith.constant 0 : index
      %25 = vector.load %arg7[%c0_20, %c0_21] : memref<128x128xbf16, #tpu.memory_space<vmem>>, vector<128x128xbf16>
      %cst_22 = arith.constant dense<0.000000e+00> : vector<128x128xf32>
      %26 = tpu.matmul %24, %25, %cst_22 {dimension_numbers = #tpu.dot_dimension_numbers<[1], [0], [0], [1], [0, 0, 1, 1], [], []>} : vector<128x128xbf16>, vector<128x128xbf16>, vector<128x128xf32> -> vector<128x128xf32>
      %27 = arith.addf %23, %26 : vector<128x128xf32>
      %c0_23 = arith.constant 0 : index
      %c0_24 = arith.constant 0 : index
      %28 = vector.load %arg8[%c0_23, %c0_24] : memref<1x128xf32, #tpu.memory_space<vmem>>, vector<1x128xf32>
      %29 = vector.broadcast %28 : vector<1x128xf32> to vector<128x128xf32>
      %30 = arith.addf %27, %29 : vector<128x128xf32>
      %cst_25 = arith.constant dense<0xFF800000> : vector<128xf32>
      %31 = vector.multi_reduction <maximumf>, %30, %cst_25 [1] : vector<128x128xf32> to vector<128xf32>
      %32 = vector.shape_cast %31 : vector<128xf32> to vector<128x1xf32>
      %33 = vector.broadcast %32 : vector<128x1xf32> to vector<128x128xf32>
      %34 = arith.subf %30, %33 : vector<128x128xf32>
      %35 = math.exp %34 : vector<128x128xf32>
      %cst_26 = arith.constant dense<0.000000e+00> : vector<128xf32>
      %36 = vector.multi_reduction <add>, %35, %cst_26 [1] : vector<128x128xf32> to vector<128xf32>
      %37 = vector.shape_cast %36 : vector<128xf32> to vector<128x1xf32>
      %38 = math.log %37 : vector<128x1xf32>
      %39 = vector.broadcast %38 : vector<128x1xf32> to vector<128x128xf32>
      %40 = arith.subf %34, %39 : vector<128x128xf32>
      %c0_27 = arith.constant 0 : index
      %c0_28 = arith.constant 0 : index
      %41 = vector.load %arg9[%c0_27, %c0_28] : memref<128x128xf32, #tpu.memory_space<vmem>>, vector<128x128xf32>
      tpu.vector_store %arg9[%c0_27, %c0_28], %40 {strides = array<i32>} : memref<128x128xf32, #tpu.memory_space<vmem>>, vector<128x128xf32>,
    } else {
    }
    return
  }
  func.func @transform_0(%arg0: i32, %arg1: i32) -> (i32, i32) {
    %c0_i32 = arith.constant 0 : i32
    return %arg0, %arg1 : i32, i32
  }
  func.func @transform_1(%arg0: i32, %arg1: i32) -> (i32, i32) {
    %c0_i32 = arith.constant 0 : i32
    %c0_i32_0 = arith.constant 0 : i32
    return %arg1, %c0_i32 : i32, i32
  }
  func.func @transform_2(%arg0: i32, %arg1: i32) -> (i32, i32) {
    %c0_i32 = arith.constant 0 : i32
    %c0_i32_0 = arith.constant 0 : i32
    return %arg0, %c0_i32 : i32, i32
  }
  func.func @transform_3(%arg0: i32, %arg1: i32) -> (i32, i32) {
    %c0_i32 = arith.constant 0 : i32
    %c0_i32_0 = arith.constant 0 : i32
    %c0_i32_1 = arith.constant 0 : i32
    return %c0_i32, %c0_i32_0 : i32, i32
  }
  func.func @transform_4(%arg0: i32, %arg1: i32) -> (i32, i32) {
    %c0_i32 = arith.constant 0 : i32
    %c0_i32_0 = arith.constant 0 : i32
    %c0_i32_1 = arith.constant 0 : i32
    return %c0_i32, %c0_i32_0 : i32, i32
  }
  func.func @transform_5(%arg0: i32, %arg1: i32) -> (i32, i32) {
    %c0_i32 = arith.constant 0 : i32
    %c0_i32_0 = arith.constant 0 : i32
    %c0_i32_1 = arith.constant 0 : i32
    return %c0_i32, %c0_i32_0 : i32, i32
  }
  func.func @transform_6(%arg0: i32, %arg1: i32) -> (i32, i32) {
    %c0_i32 = arith.constant 0 : i32
    %c0_i32_0 = arith.constant 0 : i32
    %c0_i32_1 = arith.constant 0 : i32
    return %c0_i32, %c0_i32_0 : i32, i32
  }
  func.func @transform_7(%arg0: i32, %arg1: i32) -> (i32, i32) {
    %c0_i32 = arith.constant 0 : i32
    %c0_i32_0 = arith.constant 0 : i32
    return %arg0, %c0_i32 : i32, i32
  }
}

</mosaic_0001>

<bundles_post_ra>
// kernel: gcn_forward.2
= control target key start
LH: loop header
LB: loop body
LE: loop exit
PB: predicated region body
PF: predicated region fallthrough
CT: control target
= control target key end

     0   :  { %s1336_s21 = smov 0   ;;  %s1463_s0 = inlined_call_operand.vmem [shape: bf16[256,128], index: 0, kind: input, shape index: {}]   ;;  %s1464_s1 = inlined_call_operand.vmem [shape: bf16[128,128], index: 1, kind: input, shape index: {}]   ;;  %s1465_s2 = inlined_call_operand.vmem [shape: f32[1,128], index: 2, kind: input, shape index: {}]   ;;  %s1466_s3 = inlined_call_operand.vmem [shape: bf16[128,128], index: 3, kind: input, shape index: {}]   ;;  %s1467_s4 = inlined_call_operand.vmem [shape: f32[1,128], index: 4, kind: input, shape index: {}]   ;;  %s1468_s5 = inlined_call_operand.vmem [shape: bf16[256,128], index: 5, kind: output, shape index: {0}]   ;;  %s1469_s6 = inlined_call_operand.vmem [shape: bf16[256,128], index: 6, kind: output, shape index: {1}]  }
   0x1 LB: > { %s968_s22 = sadd.s32 4294967295, %s1299_s21   ;;  %p972_p0 = scmp.ge.s32.totalorder %s1299_s21, 1  ;;  %s1299_s21 = sphi %s1336_s21, %s17_s21  }
   0x2   : > { %p216_p1 = scmp.lt.s32.totalorder %s1299_s21, 3 }
   0x4   : > { %p217_p2 = pnand %p972_p0, %p216_p1 }
   0x5   : > { %v1269_v0 = vld [vmem:[%s1464_s1] sm:$0xff] (!%p217_p2)   ;;  %s973_s25 = sshll.u32 (!%p217_p2), %s968_s22, 4  ;;  %v1270_v1 = vld [vmem:[%s1464_s1 + $0x8] sm:$0xff] (!%p217_p2)   ;;  %v1271_v2 = vld [vmem:[%s1464_s1 + $0x10] sm:$0xff] (!%p217_p2)  }
   0x6   : > { %220 = sbr.rel (%p217_p2) target bundleno = 505 (0x1f9), region = 40  ;;  %p252_p3 = scmp.lt.s32.totalorder (!%p217_p2), %s973_s25, 31  ;;  %1197 = vmatprep.subr.bf16.mxu0 (!%p217_p2), %v1269_v0  ;;  %v1272_v3 = vld [vmem:[%s1464_s1 + $0x18] sm:$0xff] (!%p217_p2)   ;;  %v1273_v5 = vld [vmem:[%s1464_s1 + $0x20] sm:$0xff] (!%p217_p2)   ;;  %v1274_v6 = vld [vmem:[%s1464_s1 + $0x28] sm:$0xff] (!%p217_p2)  }
   0x7   : > { %1198 = vmatpush3.bf16.msra.mxu0 (!%p217_p2), %v1269_v0  ;;  %v1285_v7 = vld [vmem:[%s1466_s3] sm:$0xff] (!%p217_p2)   ;;  %v1286_v8 = vld [vmem:[%s1466_s3 + $0x8] sm:$0xff] (!%p217_p2)   ;;  %v1275_v9 = vld [vmem:[%s1464_s1 + $0x30] sm:$0xff] (!%p217_p2)  }
   0x8   : > { %1199 = vmatprep.subr.bf16.mxu0 (!%p217_p2), %v1270_v1  ;;  %1229 = vmatprep.subr.bf16.mxu1 (!%p217_p2), %v1285_v7  ;;  %v1287_v10 = vld [vmem:[%s1466_s3 + $0x10] sm:$0xff] (!%p217_p2)   ;;  %v1276_v11 = vld [vmem:[%s1464_s1 + $0x38] sm:$0xff] (!%p217_p2)   ;;  %v1289_v13 = vld [vmem:[%s1466_s3 + $0x20] sm:$0xff] (!%p217_p2)  }
   0x9   : > { %1230 = vmatpush3.bf16.msra.mxu1 (!%p217_p2), %v1285_v7  ;;  %v1288_v12 = vld [vmem:[%s1466_s3 + $0x18] sm:$0xff] (!%p217_p2)   ;;  %v1290_v21 = vld [vmem:[%s1466_s3 + $0x28] sm:$0xff] (!%p217_p2)   ;;  %v1291_v22 = vld [vmem:[%s1466_s3 + $0x30] sm:$0xff] (!%p217_p2)  }
   0xa   : > { %1231 = vmatprep.subr.bf16.mxu1 (!%p217_p2), %v1286_v8  ;;  %v1292_v23 = vld [vmem:[%s1466_s3 + $0x38] sm:$0xff] (!%p217_p2)   ;;  %v1411_v24 = vld [vmem:[%s1465_s2] ss:$0 sm:$0xff] (!%p217_p2) }
   0xb   : > { %1200 = vmatpush3.bf16.msra.mxu0 (!%p217_p2), %v1270_v1 }
   0xc   : > { %1201 = vmatprep.subr.bf16.mxu0 (!%p217_p2), %v1271_v2 }
   0xd   : > { %s1471_s25 = smov (!%p252_p3, %s973_s25), 31  ;;  %1232 = vmatpush3.bf16.msra.mxu1 %v1286_v8 }
   0xe   : > { %s1353_s30 = sshll.u32 %s1471_s25, 2  ;;  %1233 = vmatprep.subr.bf16.mxu1 %v1287_v10 }
   0xf   : > { %s1359_s9 = scalar_lea.vmem %s1463_s0, %s1353_s30  ;;  %1202 = vmatpush3.bf16.msra.mxu0 %v1271_v2  ;;  %s1421_s18 = scalar_lea.vmem %s1468_s5, %s1353_s30 }
  0x10   : > { %v1277_v4 = vld [vmem:[%s1359_s9] sm:$0xff]   ;;  %1203 = vmatprep.subr.bf16.mxu0 %v1272_v3  ;;  %v1278_v14 = vld [vmem:[%s1359_s9 + $0x8] sm:$0xff]   ;;  %v1279_v15 = vld [vmem:[%s1359_s9 + $0x10] sm:$0xff]   ;;  %s1450_s24 = scalar_lea.vmem %s1469_s6, %s1353_s30 }
  0x11   : > { %1213 = vmatprep.mubr.bf16.mxu0 %v1277_v4  ;;  %1234 = vmatpush3.bf16.msra.mxu1 %v1287_v10  ;;  %v1280_v16 = vld [vmem:[%s1359_s9 + $0x18] sm:$0xff]   ;;  %v1281_v17 = vld [vmem:[%s1359_s9 + $0x20] sm:$0xff]   ;;  %v1282_v18 = vld [vmem:[%s1359_s9 + $0x28] sm:$0xff]  }
  0x12   : > { %1235 = vmatprep.subr.bf16.mxu1 %v1288_v12  ;;  %v1283_v19 = vld [vmem:[%s1359_s9 + $0x30] sm:$0xff]   ;;  %v1284_v20 = vld [vmem:[%s1359_s9 + $0x38] sm:$0xff]  }
  0x13   : > { %1204 = vmatpush3.bf16.msra.mxu0 %v1272_v3 }
  0x14   : > { %1205 = vmatprep.subr.bf16.mxu0 %v1273_v5 }
  0x15   : > { %1236 = vmatpush3.bf16.msra.mxu1 %v1288_v12 }
  0x16   : > { %1237 = vmatprep.subr.bf16.mxu1 %v1289_v13 }
  0x17   : > { %1206 = vmatpush3.bf16.msra.mxu0 %v1273_v5 }
  0x18   : > { %1207 = vmatprep.subr.bf16.mxu0 %v1274_v6 }
  0x19   : > { %1238 = vmatpush3.bf16.msra.mxu1 %v1289_v13 }
  0x1a   : > { %1239 = vmatprep.subr.bf16.mxu1 %v1290_v21 }
  0x1b   : > { %1208 = vmatpush3.bf16.msra.mxu0 %v1274_v6 }
  0x1c   : > { %1209 = vmatprep.subr.bf16.mxu0 %v1275_v9 }
  0x1d   : > { %1240 = vmatpush3.bf16.msra.mxu1 %v1290_v21 }
  0x1e   : > { %1241 = vmatprep.subr.bf16.mxu1 %v1291_v22 }
  0x1f   : > { %1210 = vmatpush3.bf16.msra.mxu0 %v1275_v9 }
  0x20   : > { %1211 = vmatprep.subr.bf16.mxu0 %v1276_v11 }
  0x21   : > { %1242 = vmatpush3.bf16.msra.mxu1 %v1291_v22 }
  0x22   : > { %1243 = vmatprep.subr.bf16.mxu1 %v1292_v23 }
  0x23   : > { %1212 = vmatpush3.bf16.msra.mxu0 %v1276_v11 }
  0x25   : > { %1244 = vmatpush3.bf16.msra.mxu1 %v1292_v23 }
  0x26   : > { %1214 = vmatmul.mubr.bf16.vlgmr.msra.gmra.mrb[0].mxu0 %v1278_v14 }
  0x27   : > { %1217 = vmatprep.mubr.bf16.mxu0 %v1279_v15 }
  0x2e   : > { %1218 = vmatmul.mubr.bf16.gmra.mrb[4].mxu0 %v1280_v16 }
  0x2f   : > { %1221 = vmatprep.mubr.bf16.mxu0 %v1281_v17 }
  0x36   : > { %1222 = vmatmul.mubr.bf16.gmra.mrb[8].mxu0 %v1282_v18 }
  0x37   : > { %1225 = vmatprep.mubr.bf16.mxu0 %v1283_v19 }
  0x3e   : > { %1226 = vmatmul.mubr.bf16.gmra.mrb[12].mxu0 %v1284_v20 }
  0xf9   : > { %v1215_v25 = vpop.f32.mrb[0].mxu0 }
  0xfa   : > { %v448_v26 = vadd.f32 %v1215_v25, %v1411_v24  ;;  %v439_v27 = vpop.f32.mrb[1].mxu0 }
  0xfb   : > { %v440_v28 = vadd.f32 %v1411_v24, %v439_v27  ;;  %v1216_v29 = vpop.f32.mrb[2].mxu0 }
  0xfc   : > { %v520_v30 = vmul.f32 0.01, %v448_v26  ;;  %v451_v31 = vadd.f32 %v1216_v29, %v1411_v24  ;;  %v442_v32 = vpop.f32.mrb[3].mxu0  ;;  %vm504_vm0 = vcmp.ge.f32.partialorder %v448_v26, 0.0 }
  0xfd   : > { %v518_v33 = vmul.f32 0.01, %v440_v28  ;;  %v443_v34 = vadd.f32 %v1411_v24, %v442_v32  ;;  %vm502_vm2 = vcmp.ge.f32.partialorder %v440_v28, 0.0 }
  0xfe   : > { %vm505_vm1 = vcmp.ge.f32.partialorder %v451_v31, 0.0  ;;  %v521_v35 = vmul.f32 0.01, %v451_v31  ;;  %v536_v37 = vsel %vm504_vm0, %v448_v26, %v520_v30 }
  0xff   : > { %v519_v36 = vmul.f32 0.01, %v443_v34  ;;  %vm503_vm3 = vcmp.ge.f32.partialorder %v443_v34, 0.0  ;;  %v534_v40 = vsel %vm502_vm2, %v440_v28, %v518_v33 }
 0x100   : > { %v537_v38 = vsel %vm505_vm1, %v451_v31, %v521_v35 }
 0x101   : > { %v1219_v39 = vpop.f32.mrb[4].mxu0  ;;  %v535_v41 = vsel %vm503_vm3, %v443_v34, %v519_v36  ;;  %v551_v42 = vpack.c.bf16 %v537_v38, %v536_v37 }
 0x102   : > { %v464_v43 = vadd.f32 %v1219_v39, %v1411_v24  ;;  %v455_v44 = vpop.f32.mrb[5].mxu0  ;;  %v550_v45 = vpack.c.bf16 %v535_v41, %v534_v40 }
 0x103   : > { %v456_v46 = vadd.f32 %v1411_v24, %v455_v44  ;;  %v1220_v47 = vpop.f32.mrb[6].mxu0  ;;  %1151 = vst [vmem:[%s1421_s18 + $0x8] sm:$0xff] %v551_v42  }
 0x104   : > { %v524_v48 = vmul.f32 0.01, %v464_v43  ;;  %v467_v49 = vadd.f32 %v1220_v47, %v1411_v24  ;;  %v458_v50 = vpop.f32.mrb[7].mxu0  ;;  %1075 = vst [vmem:[%s1421_s18] sm:$0xff] %v550_v45   ;;  %1245 = vmatprep.mubr.bf16.mxu1 %v550_v45  ;;  %vm508_vm4 = vcmp.ge.f32.partialorder %v464_v43, 0.0 }
 0x105   : > { %v522_v51 = vmul.f32 0.01, %v456_v46  ;;  %v459_v52 = vadd.f32 %v1411_v24, %v458_v50  ;;  %1246 = vmatmul.mubr.bf16.vlgmr.msra.gmra.mrb[0].mxu1 %v551_v42  ;;  %vm506_vm5 = vcmp.ge.f32.partialorder %v456_v46, 0.0 }
 0x106   : > { %vm509_vm6 = vcmp.ge.f32.partialorder %v467_v49, 0.0  ;;  %v525_v53 = vmul.f32 0.01, %v467_v49  ;;  %v540_v55 = vsel %vm508_vm4, %v464_v43, %v524_v48 }
 0x107   : > { %vm507_vm7 = vcmp.ge.f32.partialorder %v459_v52, 0.0  ;;  %v523_v54 = vmul.f32 0.01, %v459_v52  ;;  %v538_v58 = vsel %vm506_vm5, %v456_v46, %v522_v51 }
 0x108   : > { %v541_v56 = vsel %vm509_vm6, %v467_v49, %v525_v53 }
 0x109   : > { %v1223_v57 = vpop.f32.mrb[8].mxu0  ;;  %v539_v59 = vsel %vm507_vm7, %v459_v52, %v523_v54  ;;  %v553_v60 = vpack.c.bf16 %v541_v56, %v540_v55 }
 0x10a   : > { %v480_v61 = vadd.f32 %v1223_v57, %v1411_v24  ;;  %v471_v62 = vpop.f32.mrb[9].mxu0  ;;  %v552_v63 = vpack.c.bf16 %v539_v59, %v538_v58 }
 0x10b   : > { %v472_v0 = vadd.f32 %v1411_v24, %v471_v62  ;;  %v1224_v1 = vpop.f32.mrb[10].mxu0  ;;  %1153 = vst [vmem:[%s1421_s18 + $0x18] sm:$0xff] %v553_v60  }
 0x10c   : > { %v528_v2 = vmul.f32 0.01, %v480_v61  ;;  %v483_v3 = vadd.f32 %v1224_v1, %v1411_v24  ;;  %v474_v4 = vpop.f32.mrb[11].mxu0  ;;  %1152 = vst [vmem:[%s1421_s18 + $0x10] sm:$0xff] %v552_v63   ;;  %1249 = vmatprep.mubr.bf16.mxu1 %v552_v63  ;;  %vm512_vm8 = vcmp.ge.f32.partialorder %v480_v61, 0.0 }
 0x10d   : > { %v526_v5 = vmul.f32 0.01, %v472_v0  ;;  %v475_v6 = vadd.f32 %v1411_v24, %v474_v4  ;;  %1250 = vmatmul.mubr.bf16.gmra.mrb[4].mxu1 %v553_v60  ;;  %vm510_vm9 = vcmp.ge.f32.partialorder %v472_v0, 0.0 }
 0x10e   : > { %vm513_vm10 = vcmp.ge.f32.partialorder %v483_v3, 0.0  ;;  %v529_v7 = vmul.f32 0.01, %v483_v3  ;;  %v544_v9 = vsel %vm512_vm8, %v480_v61, %v528_v2 }
 0x10f   : > { %vm511_vm11 = vcmp.ge.f32.partialorder %v475_v6, 0.0  ;;  %v527_v8 = vmul.f32 0.01, %v475_v6  ;;  %v542_v12 = vsel %vm510_vm9, %v472_v0, %v526_v5 }
 0x110   : > { %v545_v10 = vsel %vm513_vm10, %v483_v3, %v529_v7 }
 0x111   : > { %v1227_v11 = vpop.f32.mrb[12].mxu0  ;;  %v543_v13 = vsel %vm511_vm11, %v475_v6, %v527_v8  ;;  %v555_v14 = vpack.c.bf16 %v545_v10, %v544_v9 }
 0x112   : > { %v496_v15 = vadd.f32 %v1227_v11, %v1411_v24  ;;  %v487_v16 = vpop.f32.mrb[13].mxu0  ;;  %v554_v17 = vpack.c.bf16 %v543_v13, %v542_v12 }
 0x113   : > { %v488_v18 = vadd.f32 %v1411_v24, %v487_v16  ;;  %v1228_v19 = vpop.f32.mrb[14].mxu0  ;;  %1155 = vst [vmem:[%s1421_s18 + $0x28] sm:$0xff] %v555_v14  }
 0x114   : > { %v532_v20 = vmul.f32 0.01, %v496_v15  ;;  %v499_v21 = vadd.f32 %v1228_v19, %v1411_v24  ;;  %v490_v22 = vpop.f32.mrb[15].mxu0  ;;  %1154 = vst [vmem:[%s1421_s18 + $0x20] sm:$0xff] %v554_v17   ;;  %1253 = vmatprep.mubr.bf16.mxu1 %v554_v17  ;;  %vm516_vm12 = vcmp.ge.f32.partialorder %v496_v15, 0.0 }
 0x115   : > { %v530_v23 = vmul.f32 0.01, %v488_v18  ;;  %v491_v25 = vadd.f32 %v1411_v24, %v490_v22  ;;  %1254 = vmatmul.mubr.bf16.gmra.mrb[8].mxu1 %v555_v14  ;;  %vm514_vm13 = vcmp.ge.f32.partialorder %v488_v18, 0.0  ;;  %v1012_v24 = vld [vmem:[%s1467_s4] ss:$0 sm:$0xff] }
 0x116   : > { %vm517_vm14 = vcmp.ge.f32.partialorder %v499_v21, 0.0  ;;  %v533_v26 = vmul.f32 0.01, %v499_v21  ;;  %v548_v28 = vsel %vm516_vm12, %v496_v15, %v532_v20 }
 0x117   : > { %vm515_vm15 = vcmp.ge.f32.partialorder %v491_v25, 0.0  ;;  %v531_v27 = vmul.f32 0.01, %v491_v25  ;;  %v546_v30 = vsel %vm514_vm13, %v488_v18, %v530_v23 }
 0x118   : > { %v549_v29 = vsel %vm517_vm14, %v499_v21, %v533_v26 }
 0x119   : > { %v547_v31 = vsel %vm515_vm15, %v491_v25, %v531_v27  ;;  %v557_v32 = vpack.c.bf16 %v549_v29, %v548_v28 }
 0x11a   : > { %v556_v33 = vpack.c.bf16 %v547_v31, %v546_v30 }
 0x11b   : > { %1157 = vst [vmem:[%s1421_s18 + $0x38] sm:$0xff] %v557_v32  }
 0x11c   : > { %1156 = vst [vmem:[%s1421_s18 + $0x30] sm:$0xff] %v556_v33   ;;  %1257 = vmatprep.mubr.bf16.mxu1 %v556_v33 }
 0x11d   : > { %1258 = vmatmul.mubr.bf16.gmra.mrb[12].mxu1 %v557_v32 }
 0x1d8   : > { %v1247_v34 = vpop.f32.mrb[0].mxu1 }
 0x1d9   : > { %v735_v35 = vpop.f32.mrb[1].mxu1  ;;  %v744_v37 = vadd.f32 %v1247_v34, %v1012_v24 }
 0x1da   : > { %v1248_v36 = vpop.f32.mrb[2].mxu1  ;;  %v736_v40 = vadd.f32 %v1012_v24, %v735_v35 }
 0x1db   : > { %v747_v38 = vadd.f32 %v1248_v36, %v1012_v24  ;;  %v738_v39 = vpop.f32.mrb[3].mxu1 }
 0x1dc   : > { %v739_v41 = vadd.f32 %v1012_v24, %v738_v39 }
 0x1dd   : > { %v1119_v42 = vpack.c.bf16 %v747_v38, %v744_v37 }
 0x1de   : > { %v1114_v43 = vpack.c.bf16 %v739_v41, %v736_v40 }
 0x1df   : > { %1158 = vst [vmem:[%s1450_s24 + $0x8] sm:$0xff] %v1119_v42  }
 0x1e0   : > { %1115 = vst [vmem:[%s1450_s24] sm:$0xff] %v1114_v43   ;;  %v1251_v44 = vpop.f32.mrb[4].mxu1 }
 0x1e1   : > { %v751_v45 = vpop.f32.mrb[5].mxu1  ;;  %v760_v47 = vadd.f32 %v1251_v44, %v1012_v24 }
 0x1e2   : > { %v1252_v46 = vpop.f32.mrb[6].mxu1  ;;  %v752_v50 = vadd.f32 %v1012_v24, %v751_v45 }
 0x1e3   : > { %v763_v48 = vadd.f32 %v1252_v46, %v1012_v24  ;;  %v754_v49 = vpop.f32.mrb[7].mxu1 }
 0x1e4   : > { %v755_v51 = vadd.f32 %v1012_v24, %v754_v49 }
 0x1e5   : > { %v1129_v52 = vpack.c.bf16 %v763_v48, %v760_v47 }
 0x1e6   : > { %v1124_v53 = vpack.c.bf16 %v755_v51, %v752_v50 }
 0x1e7   : > { %1160 = vst [vmem:[%s1450_s24 + $0x18] sm:$0xff] %v1129_v52  }
 0x1e8   : > { %1159 = vst [vmem:[%s1450_s24 + $0x10] sm:$0xff] %v1124_v53   ;;  %v1255_v54 = vpop.f32.mrb[8].mxu1 }
 0x1e9   : > { %v767_v55 = vpop.f32.mrb[9].mxu1  ;;  %v776_v57 = vadd.f32 %v1255_v54, %v1012_v24 }
 0x1ea   : > { %v1256_v56 = vpop.f32.mrb[10].mxu1  ;;  %v768_v60 = vadd.f32 %v1012_v24, %v767_v55 }
 0x1eb   : > { %v779_v58 = vadd.f32 %v1256_v56, %v1012_v24  ;;  %v770_v59 = vpop.f32.mrb[11].mxu1 }
 0x1ec   : > { %v771_v61 = vadd.f32 %v1012_v24, %v770_v59 }
 0x1ed   : > { %v1139_v62 = vpack.c.bf16 %v779_v58, %v776_v57 }
 0x1ee   : > { %v1134_v63 = vpack.c.bf16 %v771_v61, %v768_v60 }
 0x1ef   : > { %1162 = vst [vmem:[%s1450_s24 + $0x28] sm:$0xff] %v1139_v62  }
 0x1f0   : > { %1161 = vst [vmem:[%s1450_s24 + $0x20] sm:$0xff] %v1134_v63   ;;  %v1259_v0 = vpop.f32.mrb[12].mxu1 }
 0x1f1   : > { %v783_v1 = vpop.f32.mrb[13].mxu1  ;;  %v792_v3 = vadd.f32 %v1259_v0, %v1012_v24 }
 0x1f2   : > { %v1260_v2 = vpop.f32.mrb[14].mxu1  ;;  %v784_v6 = vadd.f32 %v1012_v24, %v783_v1 }
 0x1f3   : > { %v795_v4 = vadd.f32 %v1260_v2, %v1012_v24  ;;  %v786_v5 = vpop.f32.mrb[15].mxu1 }
 0x1f4   : > { %v787_v7 = vadd.f32 %v1012_v24, %v786_v5 }
 0x1f5   : > { %v1149_v8 = vpack.c.bf16 %v795_v4, %v792_v3 }
 0x1f6   : > { %v1144_v9 = vpack.c.bf16 %v787_v7, %v784_v6 }
 0x1f7   : > { %1164 = vst [vmem:[%s1450_s24 + $0x38] sm:$0xff] %v1149_v8  }
 0x1f8   : > { %1163 = vst [vmem:[%s1450_s24 + $0x30] sm:$0xff] %v1144_v9  }
 0x1f9 PF: > { %s17_s21 = sadd.s32 1, %s1299_s21  }
 0x1fa   : > { %p14_p4 = scmp.ge.s32.totalorder %s17_s21, 4  }
 0x1fc   :  { %16 = sbr.rel (!%p14_p4) target bundleno = 1 (0x1), region = 82 }

// kernel: gcn_forward.3
= control target key start
LH: loop header
LB: loop body
LE: loop exit
PB: predicated region body
PF: predicated region fallthrough
CT: control target
= control target key end

     0   :  { %s2402_s0 = inlined_call_operand.vmem [shape: bf16[256,256], index: 0, kind: input, shape index: {}]   ;;  %s2403_s1 = inlined_call_operand.vmem [shape: bf16[256,128], index: 1, kind: input, shape index: {}]   ;;  %s2404_s2 = inlined_call_operand.vmem [shape: bf16[256,128], index: 2, kind: input, shape index: {}]   ;;  %s2405_s3 = inlined_call_operand.vmem [shape: f32[1,128], index: 3, kind: input, shape index: {}]   ;;  %s2406_s4 = inlined_call_operand.vmem [shape: bf16[128,128], index: 4, kind: input, shape index: {}]   ;;  %s2407_s5 = inlined_call_operand.vmem [shape: bf16[128,128], index: 5, kind: input, shape index: {}]   ;;  %s2408_s6 = inlined_call_operand.vmem [shape: f32[1,128], index: 6, kind: input, shape index: {}]   ;;  %s2409_s7 = inlined_call_operand.vmem [shape: f32[256,128], index: 7, kind: output, shape index: {}]  }
   0x1   :  { %2410 = sst [smem:[#allocation4_spill]] %s2402_s0 }
   0x2   :  { %s2018_s24 = smov 0   ;;  %s2020_s25 = smov 0  }
   0x3   :  { %s2022_s26 = smov 0   ;;  %s2024_s27 = smov 0  }
   0x4   :  { %s2026_s28 = smov 0   ;;  %s2028_s29 = smov 0  }
   0x5   :  { %s2030_s30 = smov 0  }
   0x6 LB: > { %s26_s8 = sadd.s32 1, %s1967_s28  ;;  %s29_s9 = sadd.s32 1, %s1971_s29  ;;  %s1975_s30 = sphi %s2030_s30, %s17_s30   ;;  %s1971_s29 = sphi %s2028_s29, %s2417_s29   ;;  %s1967_s28 = sphi %s2026_s28, %s2416_s28   ;;  %s1963_s27 = sphi %s2024_s27, %s2415_s27   ;;  %s1959_s26 = sphi %s2022_s26, %s2414_s26   ;;  %s1955_s25 = sphi %s2020_s25, %s2413_s25   ;;  %s1951_s24 = sphi %s2018_s24, %s2412_s24  }
   0x7   : > { %p27_p0 = scmp.ge.s32.totalorder %s26_s8, 2  ;;  %p45_p1 = scmp.ne.s32.totalorder %s1955_s25, %s1951_s24 }
   0x8   : > { %p46_p2 = scmp.eq.s32.totalorder %s1975_s30, 0  ;;  %s38_s13 = sadd.s32 1, %s1955_s25 }
   0x9   : > { %s2419_s8 = smov (%p27_p0, %s26_s8), 0  ;;  %s2421_s9 = smov (!%p27_p0, %s29_s9), %s1971_s29 }
   0xa   : > { %p47_p3 = por %p46_p2, %p45_p1  ;;  %p31_p4 = scmp.ge.s32.totalorder %s2421_s9, 2 }
   0xb   : > { %s34_s10 = ssub.s32 %s1967_s28, %s2419_s8  ;;  %p1524_p6 = scmp.ge.s32.totalorder %s1975_s30, 4 }
   0xc   : > { %s2423_s9 = smov (%p31_p4, %s2421_s9), 0 }
   0xd   : > { %s33_s11 = ssub.s32 %s1971_s29, %s2423_s9  ;;  %245 = sbr.rel (%p1524_p6) target bundleno = 40 (0x28), region = 32 }
   0xe   : > { %s35_s12 = sor.u32 %s34_s10, %s33_s11 }
   0xf   : > { %p36_p5 = scmp.eq.s32.totalorder %s35_s12, 0 }
  0x11   : > { %s2069_s14 = scalar_select %p36_p5, %s1955_s25, %s38_s13  }
  0x14   : > { %248 = sbr.rel (!%p47_p3) target bundleno = 40 (0x28), region = 36  ;;  %s250_s15 = sand.u32 (%p47_p3), 1, %s1955_s25  }
  0x15   : > { %s1583_s16 = sshll.u32 (%p47_p3), %s1971_s29, 5  ;;  %s1525_s17 = sshll.u32 (%p47_p3), %s250_s15, 6 }
  0x16   : > { %s255_s18 = sadd.s32 (%p47_p3), %s1967_s28, %s1583_s16  ;;  %s2411_s0 = sld [smem:[#allocation4_spill]] (%p47_p3) }
  0x17   : > { %s1528_s19 = sshll.u32 (%p47_p3), %s255_s18, 2  ;;  %s252_s23 = scalar_lea.vmem (%p47_p3), [#allocation3], %s1525_s17 }
  0x1c   : > { %s2078_s22 = scalar_lea.vmem %s2411_s0, %s1528_s19 }
  0x1d   : > { %v273_v0 = vld [vmem:[%s2078_s22] sm:$0xf]  ;;  %v275_v1 = vld [vmem:[%s2078_s22 + $0x8] sm:$0xf]  ;;  %v277_v2 = vld [vmem:[%s2078_s22 + $0x10] sm:$0xf] }
  0x1e   : > { %274 = vst [vmem:[%s252_s23] sm:$0xf] %v273_v0  ;;  %276 = vst [vmem:[%s252_s23 + $0x4] sm:$0xf] %v275_v1  ;;  %v279_v3 = vld [vmem:[%s2078_s22 + $0x18] sm:$0xf] }
  0x1f   : > { %278 = vst [vmem:[%s252_s23 + $0x8] sm:$0xf] %v277_v2  ;;  %v281_v4 = vld [vmem:[%s2078_s22 + $0x20] sm:$0xf]  ;;  %v283_v5 = vld [vmem:[%s2078_s22 + $0x28] sm:$0xf] }
  0x20   : > { %280 = vst [vmem:[%s252_s23 + $0xc] sm:$0xf] %v279_v3  ;;  %282 = vst [vmem:[%s252_s23 + $0x10] sm:$0xf] %v281_v4  ;;  %v285_v6 = vld [vmem:[%s2078_s22 + $0x30] sm:$0xf] }
  0x21   : > { %284 = vst [vmem:[%s252_s23 + $0x14] sm:$0xf] %v283_v5  ;;  %v287_v7 = vld [vmem:[%s2078_s22 + $0x38] sm:$0xf]  ;;  %v289_v8 = vld [vmem:[%s2078_s22 + $0x40] sm:$0xf] }
  0x22   : > { %286 = vst [vmem:[%s252_s23 + $0x18] sm:$0xf] %v285_v6  ;;  %288 = vst [vmem:[%s252_s23 + $0x1c] sm:$0xf] %v287_v7  ;;  %v291_v9 = vld [vmem:[%s2078_s22 + $0x48] sm:$0xf] }
  0x23   : > { %290 = vst [vmem:[%s252_s23 + $0x20] sm:$0xf] %v289_v8  ;;  %v293_v10 = vld [vmem:[%s2078_s22 + $0x50] sm:$0xf]  ;;  %v295_v11 = vld [vmem:[%s2078_s22 + $0x58] sm:$0xf] }
  0x24   : > { %292 = vst [vmem:[%s252_s23 + $0x24] sm:$0xf] %v291_v9  ;;  %294 = vst [vmem:[%s252_s23 + $0x28] sm:$0xf] %v293_v10  ;;  %v297_v12 = vld [vmem:[%s2078_s22 + $0x60] sm:$0xf] }
  0x25   : > { %296 = vst [vmem:[%s252_s23 + $0x2c] sm:$0xf] %v295_v11  ;;  %v299_v13 = vld [vmem:[%s2078_s22 + $0x68] sm:$0xf]  ;;  %v301_v14 = vld [vmem:[%s2078_s22 + $0x70] sm:$0xf] }
  0x26   : > { %298 = vst [vmem:[%s252_s23 + $0x30] sm:$0xf] %v297_v12  ;;  %300 = vst [vmem:[%s252_s23 + $0x34] sm:$0xf] %v299_v13  ;;  %v303_v15 = vld [vmem:[%s2078_s22 + $0x78] sm:$0xf] }
  0x27   : > { %302 = vst [vmem:[%s252_s23 + $0x38] sm:$0xf] %v301_v14  ;;  %304 = vst [vmem:[%s252_s23 + $0x3c] sm:$0xf] %v303_v15 }
  0x28 PF: > { %p1529_p7 = scmp.ge.s32.totalorder %s1975_s30, 1  ;;  %p376_p8 = scmp.lt.s32.totalorder %s1975_s30, 5 }
  0x2a   : > { %p377_p9 = pnand %p1529_p7, %p376_p8 }
  0x2b   : > { %s383_s10 = sand.u32 (!%p377_p9), 1, %s1951_s24   ;;  %s1531_s11 = sshll.u32 (!%p377_p9), %s1959_s26, 4 }
  0x2c   : > { %380 = sbr.rel (%p377_p9) target bundleno = 891 (0x37b), region = 85  ;;  %s1530_s12 = sshll.u32 (!%p377_p9), %s383_s10, 6 }
  0x2d   : > { %p426_p10 = scmp.lt.s32.totalorder (!%p377_p9), %s1531_s11, 31  ;;  %s1533_s13 = sshll.u32 (!%p377_p9), %s1963_s27, 4 }
  0x2e   : > { %p432_p11 = scmp.lt.s32.totalorder (!%p377_p9), %s1533_s13, 31  ;;  %s2116_s0 = scalar_lea.vmem (!%p377_p9), [#allocation3], %s1530_s12 }
  0x2f   : > { %p1537_p12 = scmp.ne.s32.totalorder (!%p377_p9), %s1959_s26, 0 }
  0x33   : > { %s2425_s11 = smov (!%p426_p10, %s1531_s11), 31  ;;  %s2427_s13 = smov (!%p432_p11, %s1533_s13), 31 }
  0x34   : > { %s1532_s15 = sshll.u32 %s2425_s11, 2  ;;  %s1534_s19 = sshll.u32 %s2427_s13, 2  ;;  %v1977_v16 = vmov (!%p1537_p12), 0.0  }
  0x35   : > { %s2104_s18 = scalar_lea.vmem %s2403_s1, %s1532_s15  ;;  %s1536_s20 = sshll.u32 %s2427_s13, 3  ;;  %448 = vst [vmem:[#allocation2] sm:$0xff] (!%p1537_p12), %v1977_v16  ;;  %449 = vst [vmem:[#allocation2 + $0x8] sm:$0xff] (!%p1537_p12), %v1977_v16 }
  0x36   : > { %s2109_s23 = scalar_lea.vmem %s2404_s2, %s1534_s19  ;;  %s2114_s27 = scalar_lea.vmem %s2409_s7, %s1536_s20  ;;  %450 = vst [vmem:[#allocation2 + $0x10] sm:$0xff] (!%p1537_p12), %v1977_v16  ;;  %451 = vst [vmem:[#allocation2 + $0x18] sm:$0xff] (!%p1537_p12), %v1977_v16 }
  0x37   : > { %447 = sbr.rel (%p1537_p12) target bundleno = 62 (0x3e), region = 93  ;;  %452 = vst [vmem:[#allocation2 + $0x20] sm:$0xff] (!%p1537_p12), %v1977_v16  ;;  %453 = vst [vmem:[#allocation2 + $0x28] sm:$0xff] (!%p1537_p12), %v1977_v16 }
  0x38   : > { %454 = vst [vmem:[#allocation2 + $0x30] sm:$0xff] (!%p1537_p12), %v1977_v16  ;;  %455 = vst [vmem:[#allocation2 + $0x38] sm:$0xff] (!%p1537_p12), %v1977_v16 }
  0x39   : > { %456 = vst [vmem:[#allocation2 + $0x40] sm:$0xff] (!%p1537_p12), %v1977_v16  ;;  %457 = vst [vmem:[#allocation2 + $0x48] sm:$0xff] (!%p1537_p12), %v1977_v16 }
  0x3a   : > { %458 = vst [vmem:[#allocation2 + $0x50] sm:$0xff] (!%p1537_p12), %v1977_v16  ;;  %459 = vst [vmem:[#allocation2 + $0x58] sm:$0xff] (!%p1537_p12), %v1977_v16 }
  0x3b   : > { %460 = vst [vmem:[#allocation2 + $0x60] sm:$0xff] (!%p1537_p12), %v1977_v16  ;;  %461 = vst [vmem:[#allocation2 + $0x68] sm:$0xff] (!%p1537_p12), %v1977_v16 }
  0x3c   : > { %462 = vst [vmem:[#allocation2 + $0x70] sm:$0xff] (!%p1537_p12), %v1977_v16  ;;  %463 = vst [vmem:[#allocation2 + $0x78] sm:$0xff] (!%p1537_p12), %v1977_v16 }
  0x3e PF: > { %v1817_v17 = vld [vmem:[%s2104_s18] sm:$0xff]   ;;  %v1818_v18 = vld [vmem:[%s2104_s18 + $0x8] sm:$0xff]   ;;  %v1819_v19 = vld [vmem:[%s2104_s18 + $0x10] sm:$0xff]   ;;  %p1554_p13 = scmp.ne.s32.totalorder %s1959_s26, 1 }
  0x3f   : > { %1632 = vmatprep.subr.bf16.mxu0 %v1817_v17  ;;  %1728 = vmatprep.subr.bf16.mxu1 %v1817_v17  ;;  %v1820_v20 = vld [vmem:[%s2104_s18 + $0x18] sm:$0xff]   ;;  %v1825_v21 = vld [vmem:[%s2116_s0] sm:$0xff]   ;;  %v1822_v24 = vld [vmem:[%s2104_s18 + $0x28] sm:$0xff]  }
  0x40   : > { %1633 = vmatpush3.bf16.msra.mxu0 %v1817_v17  ;;  %1736 = vmatpush3.bf16.msra.mxu1 %v1817_v17  ;;  %v1826_v22 = vld [vmem:[%s2116_s0 + $0x20] sm:$0xff]   ;;  %v1823_v25 = vld [vmem:[%s2104_s18 + $0x30] sm:$0xff]   ;;  %v1824_v26 = vld [vmem:[%s2104_s18 + $0x38] sm:$0xff]  }
  0x41   : > { %1634 = vmatprep.subr.bf16.mxu0 %v1818_v18  ;;  %1729 = vmatprep.subr.bf16.mxu1 %v1818_v18  ;;  %v1821_v23 = vld [vmem:[%s2104_s18 + $0x20] sm:$0xff]   ;;  %v1827_v27 = vld [vmem:[%s2116_s0 + $0x8] sm:$0xff]   ;;  %v1829_v29 = vld [vmem:[%s2116_s0 + $0x10] sm:$0xff]  }
  0x42   : > { %1648 = vmatprep.mubr.bf16.mxu0 %v1825_v21  ;;  %1656 = vmatprep.mubr.bf16.mxu1 %v1826_v22  ;;  %v1828_v28 = vld [vmem:[%s2116_s0 + $0x28] sm:$0xff]   ;;  %v1830_v30 = vld [vmem:[%s2116_s0 + $0x30] sm:$0xff]   ;;  %v1831_v31 = vld [vmem:[%s2116_s0 + $0x18] sm:$0xff]  }
  0x43   : > { %v1832_v32 = vld [vmem:[%s2116_s0 + $0x38] sm:$0xff]   ;;  %v466_v33 = vld [vmem:[#allocation2 + $0x10] sm:$0xff]  ;;  %v464_v35 = vld [vmem:[#allocation2] sm:$0xff] }
  0x44   : > { %1635 = vmatpush3.bf16.msra.mxu0 %v1818_v18  ;;  %1737 = vmatpush3.bf16.msra.mxu1 %v1818_v18  ;;  %v474_v34 = vld [vmem:[#allocation2 + $0x50] sm:$0xff]  ;;  %v472_v36 = vld [vmem:[#allocation2 + $0x40] sm:$0xff]  ;;  %v467_v39 = vld [vmem:[#allocation2 + $0x18] sm:$0xff] }
  0x45   : > { %1636 = vmatprep.subr.bf16.mxu0 %v1819_v19  ;;  %1730 = vmatprep.subr.bf16.mxu1 %v1819_v19  ;;  %v475_v40 = vld [vmem:[#allocation2 + $0x58] sm:$0xff]  ;;  %v465_v45 = vld [vmem:[#allocation2 + $0x8] sm:$0xff]  ;;  %v470_v57 = vld [vmem:[#allocation2 + $0x30] sm:$0xff] }
  0x46   : > { %v473_v46 = vld [vmem:[#allocation2 + $0x48] sm:$0xff]  ;;  %v478_v58 = vld [vmem:[#allocation2 + $0x70] sm:$0xff]  ;;  %v468_v59 = vld [vmem:[#allocation2 + $0x20] sm:$0xff] }
  0x47   : > { %v476_v60 = vld [vmem:[#allocation2 + $0x60] sm:$0xff]  ;;  %v471_v63 = vld [vmem:[#allocation2 + $0x38] sm:$0xff]  ;;  %v469_v5 = vld [vmem:[#allocation2 + $0x28] sm:$0xff] }
  0x48   : > { %1637 = vmatpush3.bf16.msra.mxu0 %v1819_v19  ;;  %1738 = vmatpush3.bf16.msra.mxu1 %v1819_v19  ;;  %v479_v0 = vld [vmem:[#allocation2 + $0x78] sm:$0xff]  ;;  %v477_v6 = vld [vmem:[#allocation2 + $0x68] sm:$0xff]  ;;  %v1833_v17 = vld [vmem:[%s2407_s5] sm:$0xff] (!%p1554_p13)  }
  0x49   : > { %1638 = vmatprep.subr.bf16.mxu0 %v1820_v20  ;;  %1731 = vmatprep.subr.bf16.mxu1 %v1820_v20  ;;  %v1834_v18 = vld [vmem:[%s2406_s4] sm:$0xff] (!%p1554_p13)   ;;  %v1835_v19 = vld [vmem:[%s2407_s5 + $0x8] sm:$0xff] (!%p1554_p13)   ;;  %v1837_v21 = vld [vmem:[%s2407_s5 + $0x10] sm:$0xff] (!%p1554_p13)  }
  0x4a   : > { %v1838_v22 = vld [vmem:[%s2406_s4 + $0x10] sm:$0xff] (!%p1554_p13)  }
  0x4c   : > { %1639 = vmatpush3.bf16.msra.mxu0 %v1820_v20  ;;  %1739 = vmatpush3.bf16.msra.mxu1 %v1820_v20  ;;  %v1836_v20 = vld [vmem:[%s2406_s4 + $0x8] sm:$0xff] (!%p1554_p13)  }
  0x4d   : > { %1640 = vmatprep.subr.bf16.mxu0 %v1821_v23  ;;  %1732 = vmatprep.subr.bf16.mxu1 %v1821_v23 }
  0x50   : > { %1641 = vmatpush3.bf16.msra.mxu0 %v1821_v23  ;;  %1740 = vmatpush3.bf16.msra.mxu1 %v1821_v23  ;;  %v1839_v23 = vld [vmem:[%s2407_s5 + $0x18] sm:$0xff] (!%p1554_p13)  }
  0x51   : > { %1642 = vmatprep.subr.bf16.mxu0 %v1822_v24  ;;  %1733 = vmatprep.subr.bf16.mxu1 %v1822_v24 }
  0x54   : > { %1643 = vmatpush3.bf16.msra.mxu0 %v1822_v24  ;;  %1741 = vmatpush3.bf16.msra.mxu1 %v1822_v24  ;;  %v1840_v24 = vld [vmem:[%s2406_s4 + $0x18] sm:$0xff] (!%p1554_p13)  }
  0x55   : > { %1644 = vmatprep.subr.bf16.mxu0 %v1823_v25  ;;  %1734 = vmatprep.subr.bf16.mxu1 %v1823_v25 }
  0x58   : > { %1645 = vmatpush3.bf16.msra.mxu0 %v1823_v25  ;;  %1742 = vmatpush3.bf16.msra.mxu1 %v1823_v25  ;;  %v1841_v25 = vld [vmem:[%s2407_s5 + $0x20] sm:$0xff] (!%p1554_p13)  }
  0x59   : > { %1646 = vmatprep.subr.bf16.mxu0 %v1824_v26  ;;  %1735 = vmatprep.subr.bf16.mxu1 %v1824_v26 }
  0x5c   : > { %1647 = vmatpush3.bf16.msra.mxu0 %v1824_v26  ;;  %1743 = vmatpush3.bf16.msra.mxu1 %v1824_v26  ;;  %v1842_v26 = vld [vmem:[%s2406_s4 + $0x20] sm:$0xff] (!%p1554_p13)  }
  0x5d   : > { %1664 = vmatprep.subr.bf16.mxu1 (!%p1554_p13), %v1833_v17  ;;  %1696 = vmatprep.subr.bf16.mxu0 (!%p1554_p13), %v1834_v18 }
  0x5f   : > { %1649 = vmatmul.mubr.bf16.vlgmr.msra.gmra.mrb[0].mxu0 %v1827_v27  ;;  %1657 = vmatmul.mubr.bf16.vlgmr.msra.gmra.mrb[0].mxu1 %v1828_v28  ;;  %v1843_v27 = vld [vmem:[%s2407_s5 + $0x28] sm:$0xff] (!%p1554_p13)  }
  0x60   : > { %1652 = vmatprep.mubr.bf16.mxu0 %v1829_v29  ;;  %1660 = vmatprep.mubr.bf16.mxu1 %v1830_v30  ;;  %v1844_v28 = vld [vmem:[%s2406_s4 + $0x28] sm:$0xff] (!%p1554_p13)  }
  0x61   : > { %1665 = vmatpush3.bf16.msra.mxu1 (!%p1554_p13), %v1833_v17  ;;  %1697 = vmatpush3.bf16.msra.mxu0 (!%p1554_p13), %v1834_v18 }
  0x62   : > { %1666 = vmatprep.subr.bf16.mxu1 (!%p1554_p13), %v1835_v19  ;;  %1698 = vmatprep.subr.bf16.mxu0 (!%p1554_p13), %v1836_v20 }
  0x65   : > { %1667 = vmatpush3.bf16.msra.mxu1 (!%p1554_p13), %v1835_v19  ;;  %1699 = vmatpush3.bf16.msra.mxu0 (!%p1554_p13), %v1836_v20 }
  0x66   : > { %1668 = vmatprep.subr.bf16.mxu1 (!%p1554_p13), %v1837_v21  ;;  %1700 = vmatprep.subr.bf16.mxu0 (!%p1554_p13), %v1838_v22 }
  0x67   : > { %1653 = vmatmul.mubr.bf16.gmra.mrb[4].mxu0 %v1831_v31  ;;  %1661 = vmatmul.mubr.bf16.gmra.mrb[4].mxu1 %v1832_v32  ;;  %v2175_v31 = vld [vmem:[%s2405_s3] ss:$0 sm:$0xff] (!%p1554_p13) }
  0x69   : > { %1669 = vmatpush3.bf16.msra.mxu1 (!%p1554_p13), %v1837_v21  ;;  %1701 = vmatpush3.bf16.msra.mxu0 (!%p1554_p13), %v1838_v22 }
  0x6a   : > { %1670 = vmatprep.subr.bf16.mxu1 (!%p1554_p13), %v1839_v23  ;;  %1702 = vmatprep.subr.bf16.mxu0 (!%p1554_p13), %v1840_v24 }
  0x6d   : > { %1671 = vmatpush3.bf16.msra.mxu1 (!%p1554_p13), %v1839_v23  ;;  %1703 = vmatpush3.bf16.msra.mxu0 (!%p1554_p13), %v1840_v24 }
  0x6e   : > { %1672 = vmatprep.subr.bf16.mxu1 (!%p1554_p13), %v1841_v25  ;;  %1704 = vmatprep.subr.bf16.mxu0 (!%p1554_p13), %v1842_v26 }
  0x71   : > { %1673 = vmatpush3.bf16.msra.mxu1 (!%p1554_p13), %v1841_v25  ;;  %1705 = vmatpush3.bf16.msra.mxu0 (!%p1554_p13), %v1842_v26  ;;  %v1852_v25 = vld [vmem:[%s2109_s23 + $0x18] sm:$0xff] (!%p1554_p13)   ;;  %v1853_v26 = vld [vmem:[%s2109_s23 + $0x20] sm:$0xff] (!%p1554_p13)  }
  0x72   : > { %1674 = vmatprep.subr.bf16.mxu1 (!%p1554_p13), %v1843_v27  ;;  %1706 = vmatprep.subr.bf16.mxu0 (!%p1554_p13), %v1844_v28 }
  0x75   : > { %1675 = vmatpush3.bf16.msra.mxu1 (!%p1554_p13), %v1843_v27  ;;  %1707 = vmatpush3.bf16.msra.mxu0 (!%p1554_p13), %v1844_v28 }
 0x132   : > { %v1650_v37 = vpop.f32.mrb[0].mxu0  ;;  %v1658_v38 = vpop.f32.mrb[0].mxu1 }
 0x133   : > { %v707_v41 = vadd.f32 %v1650_v37, %v466_v33  ;;  %v715_v42 = vadd.f32 %v1658_v38, %v474_v34  ;;  %v642_v43 = vpop.f32.mrb[1].mxu0  ;;  %v674_v44 = vpop.f32.mrb[1].mxu1  ;;  %v1849_v34 = vld [vmem:[%s2109_s23] sm:$0xff] (!%p1554_p13)  }
 0x134   : > { %v705_v47 = vadd.f32 %v642_v43, %v464_v35  ;;  %v713_v48 = vadd.f32 %v674_v44, %v472_v36  ;;  %v1651_v49 = vpop.f32.mrb[2].mxu0  ;;  %v1659_v50 = vpop.f32.mrb[2].mxu1  ;;  %v1845_v35 = vld [vmem:[%s2407_s5 + $0x30] sm:$0xff] (!%p1554_p13)   ;;  %1712 = vmatprep.mubr.bf16.mxu0 (!%p1554_p13), %v1849_v34 }
 0x135   : > { %723 = vst [vmem:[#allocation2 + $0x10] sm:$0xff] %v707_v41  ;;  %731 = vst [vmem:[#allocation2 + $0x50] sm:$0xff] %v715_v42  ;;  %v708_v51 = vadd.f32 %v1651_v49, %v467_v39  ;;  %v716_v52 = vadd.f32 %v1659_v50, %v475_v40  ;;  %v645_v53 = vpop.f32.mrb[3].mxu0  ;;  %v677_v54 = vpop.f32.mrb[3].mxu1  ;;  %v1846_v40 = vld [vmem:[%s2406_s4 + $0x30] sm:$0xff] (!%p1554_p13)   ;;  %1676 = vmatprep.subr.bf16.mxu1 (!%p1554_p13), %v1845_v35 }
 0x136   : > { %721 = vst [vmem:[#allocation2] sm:$0xff] %v705_v47  ;;  %729 = vst [vmem:[#allocation2 + $0x40] sm:$0xff] %v713_v48  ;;  %v706_v55 = vadd.f32 %v645_v53, %v465_v45  ;;  %v714_v56 = vadd.f32 %v677_v54, %v473_v46  ;;  %v1847_v48 = vld [vmem:[%s2407_s5 + $0x38] sm:$0xff] (!%p1554_p13)   ;;  %1708 = vmatprep.subr.bf16.mxu0 (!%p1554_p13), %v1846_v40  ;;  %1677 = vmatpush3.bf16.msra.mxu1 (!%p1554_p13), %v1845_v35 }
 0x137   : > { %724 = vst [vmem:[#allocation2 + $0x18] sm:$0xff] %v708_v51  ;;  %732 = vst [vmem:[#allocation2 + $0x58] sm:$0xff] %v716_v52  ;;  %1709 = vmatpush3.bf16.msra.mxu0 (!%p1554_p13), %v1846_v40  ;;  %1678 = vmatprep.subr.bf16.mxu1 (!%p1554_p13), %v1847_v48 }
 0x138   : > { %722 = vst [vmem:[#allocation2 + $0x8] sm:$0xff] %v706_v55  ;;  %730 = vst [vmem:[#allocation2 + $0x48] sm:$0xff] %v714_v56  ;;  %v1848_v56 = vld [vmem:[%s2406_s4 + $0x38] sm:$0xff] (!%p1554_p13)  }
 0x139   : > { %1710 = vmatprep.subr.bf16.mxu0 (!%p1554_p13), %v1848_v56 }
 0x13a   : > { %v1654_v61 = vpop.f32.mrb[4].mxu0  ;;  %v1662_v62 = vpop.f32.mrb[4].mxu1  ;;  %740 = sbr.rel (%p1554_p13) target bundleno = 891 (0x37b), region = 97  ;;  %1679 = vmatpush3.bf16.msra.mxu1 (!%p1554_p13), %v1847_v48 }
 0x13b   : > { %v711_v1 = vadd.f32 %v1654_v61, %v470_v57  ;;  %v719_v2 = vadd.f32 %v1662_v62, %v478_v58  ;;  %v658_v3 = vpop.f32.mrb[5].mxu0  ;;  %v690_v4 = vpop.f32.mrb[5].mxu1  ;;  %1711 = vmatpush3.bf16.msra.mxu0 (!%p1554_p13), %v1848_v56 }
 0x13c   : > { %v709_v7 = vadd.f32 %v658_v3, %v468_v59  ;;  %v717_v8 = vadd.f32 %v690_v4, %v476_v60  ;;  %v1655_v9 = vpop.f32.mrb[6].mxu0  ;;  %v1663_v10 = vpop.f32.mrb[6].mxu1  ;;  %v743_v36 = vld [vmem:[#allocation2 + $0x10] sm:$0xff] (!%p1554_p13)  ;;  %v1850_v4 = vld [vmem:[%s2109_s23 + $0x8] sm:$0xff] (!%p1554_p13)  }
 0x13d   : > { %727 = vst [vmem:[#allocation2 + $0x30] sm:$0xff] %v711_v1  ;;  %735 = vst [vmem:[#allocation2 + $0x70] sm:$0xff] %v719_v2  ;;  %v712_v11 = vadd.f32 %v1655_v9, %v471_v63  ;;  %v720_v12 = vadd.f32 %v1663_v10, %v479_v0  ;;  %v661_v13 = vpop.f32.mrb[7].mxu0  ;;  %v693_v14 = vpop.f32.mrb[7].mxu1  ;;  %v741_v29 = vld [vmem:[#allocation2] sm:$0xff] (!%p1554_p13)  ;;  %v766_v41 = vadd.f32 (!%p1554_p13), %v2175_v31, %v743_v36  ;;  %v751_v10 = vld [vmem:[#allocation2 + $0x50] sm:$0xff] (!%p1554_p13) }
 0x13e   : > { %725 = vst [vmem:[#allocation2 + $0x20] sm:$0xff] %v709_v7  ;;  %733 = vst [vmem:[#allocation2 + $0x60] sm:$0xff] %v717_v8  ;;  %v710_v15 = vadd.f32 %v661_v13, %v469_v5  ;;  %v718_v16 = vadd.f32 %v693_v14, %v477_v6  ;;  %v764_v32 = vadd.f32 (!%p1554_p13), %v2175_v31, %v741_v29  ;;  %v744_v37 = vld [vmem:[#allocation2 + $0x18] sm:$0xff] (!%p1554_p13)  ;;  %v749_v58 = vld [vmem:[#allocation2 + $0x40] sm:$0xff] (!%p1554_p13)  ;;  %1713 = vmatmul.mubr.bf16.vlgmr.msra.gmra.mrb[0].mxu0 (!%p1554_p13), %v1850_v4 }
 0x13f   : > { %728 = vst [vmem:[#allocation2 + $0x38] sm:$0xff] %v712_v11  ;;  %736 = vst [vmem:[#allocation2 + $0x78] sm:$0xff] %v720_v12  ;;  %v742_v30 = vld [vmem:[#allocation2 + $0x8] sm:$0xff] (!%p1554_p13)  ;;  %v767_v42 = vadd.f32 (!%p1554_p13), %v2175_v31, %v744_v37  ;;  %vm782_vm2 = vcmp.ge.f32.partialorder (!%p1554_p13), %v766_v41, 0.0  ;;  %v798_v50 = vmul.f32 (!%p1554_p13), 0.01, %v766_v41  ;;  %v772_v2 = vadd.f32 (!%p1554_p13), %v2175_v31, %v749_v58 }
 0x140   : > { %726 = vst [vmem:[#allocation2 + $0x28] sm:$0xff] %v710_v15  ;;  %734 = vst [vmem:[#allocation2 + $0x68] sm:$0xff] %v718_v16  ;;  %v765_v33 = vadd.f32 (!%p1554_p13), %v2175_v31, %v742_v30  ;;  %vm780_vm0 = vcmp.ge.f32.partialorder (!%p1554_p13), %v764_v32, 0.0  ;;  %v796_v38 = vmul.f32 (!%p1554_p13), 0.01, %v764_v32  ;;  %v750_v59 = vld [vmem:[#allocation2 + $0x48] sm:$0xff] (!%p1554_p13)  ;;  %v774_v18 = vadd.f32 (!%p1554_p13), %v2175_v31, %v751_v10 }
 0x141   : > { %v799_v51 = vmul.f32 0.01, %v767_v42  ;;  %vm783_vm3 = vcmp.ge.f32.partialorder %v767_v42, 0.0  ;;  %v814_v62 = vsel %vm782_vm2, %v766_v41, %v798_v50  ;;  %v773_v3 = vadd.f32 %v2175_v31, %v750_v59  ;;  %v1851_v6 = vld [vmem:[%s2109_s23 + $0x10] sm:$0xff]   ;;  %v752_v11 = vld [vmem:[#allocation2 + $0x58] sm:$0xff] }
 0x142   : > { %vm781_vm1 = vcmp.ge.f32.partialorder %v765_v33, 0.0  ;;  %v797_v39 = vmul.f32 0.01, %v765_v33  ;;  %v812_v44 = vsel %vm780_vm0, %v764_v32, %v796_v38  ;;  %v804_v12 = vmul.f32 0.01, %v772_v2  ;;  %1716 = vmatprep.mubr.bf16.mxu0 %v1851_v6 }
 0x143   : > { %v815_v63 = vsel %vm783_vm3, %v767_v42, %v799_v51  ;;  %v805_v13 = vmul.f32 0.01, %v773_v3  ;;  %vm788_vm8 = vcmp.ge.f32.partialorder %v772_v2, 0.0  ;;  %vm789_vm9 = vcmp.ge.f32.partialorder %v773_v3, 0.0  ;;  %v1854_v42 = vld [vmem:[%s2109_s23 + $0x28] sm:$0xff]  }
 0x144   : > { %v813_v45 = vsel %vm781_vm1, %v765_v33, %v797_v39  ;;  %v747_v54 = vld [vmem:[#allocation2 + $0x30] sm:$0xff]  ;;  %v861_v5 = vpack.c.bf16 %v815_v63, %v814_v62  ;;  %v775_v19 = vadd.f32 %v2175_v31, %v752_v11  ;;  %v820_v20 = vsel %vm788_vm8, %v772_v2, %v804_v12 }
 0x145   : > { %v745_v43 = vld [vmem:[#allocation2 + $0x20] sm:$0xff]  ;;  %v860_v49 = vpack.c.bf16 %v813_v45, %v812_v44  ;;  %v770_v60 = vadd.f32 %v2175_v31, %v747_v54  ;;  %v821_v21 = vsel %vm789_vm9, %v773_v3, %v805_v13  ;;  %vm790_vm10 = vcmp.ge.f32.partialorder %v774_v18, 0.0  ;;  %v755_v30 = vld [vmem:[#allocation2 + $0x70] sm:$0xff] }
 0x146   : > { %v768_v47 = vadd.f32 %v2175_v31, %v745_v43  ;;  %v748_v55 = vld [vmem:[#allocation2 + $0x38] sm:$0xff]  ;;  %v753_v14 = vld [vmem:[#allocation2 + $0x60] sm:$0xff]  ;;  %v864_v27 = vpack.c.bf16 %v821_v21, %v820_v20  ;;  %v806_v28 = vmul.f32 0.01, %v774_v18  ;;  %v807_v29 = vmul.f32 0.01, %v775_v19  ;;  %1717 = vmatmul.mubr.bf16.gmra.mrb[4].mxu0 %v1852_v25 }
 0x147   : > { %v746_v46 = vld [vmem:[#allocation2 + $0x28] sm:$0xff]  ;;  %1680 = vmatprep.mubr.bf16.mxu1 %v860_v49  ;;  %v771_v61 = vadd.f32 %v2175_v31, %v748_v55  ;;  %vm786_vm6 = vcmp.ge.f32.partialorder %v770_v60, 0.0  ;;  %v802_v7 = vmul.f32 0.01, %v770_v60  ;;  %v776_v22 = vadd.f32 %v2175_v31, %v753_v14  ;;  %v756_v34 = vld [vmem:[#allocation2 + $0x78] sm:$0xff]  ;;  %1720 = vmatprep.mubr.bf16.mxu0 %v1853_v26 }
 0x148   : > { %v769_v52 = vadd.f32 %v2175_v31, %v746_v46  ;;  %v800_v53 = vmul.f32 0.01, %v768_v47  ;;  %vm784_vm4 = vcmp.ge.f32.partialorder %v768_v47, 0.0  ;;  %v754_v15 = vld [vmem:[#allocation2 + $0x68] sm:$0xff]  ;;  %1681 = vmatmul.mubr.bf16.vlgmr.msra.gmra.mrb[0].mxu1 %v861_v5  ;;  %vm791_vm11 = vcmp.ge.f32.partialorder %v775_v19, 0.0  ;;  %v1855_v46 = vld [vmem:[%s2109_s23 + $0x30] sm:$0xff]  }
 0x149   : > { %vm787_vm7 = vcmp.ge.f32.partialorder %v771_v61, 0.0  ;;  %v803_v9 = vmul.f32 0.01, %v771_v61  ;;  %v818_v16 = vsel %vm786_vm6, %v770_v60, %v802_v7  ;;  %v777_v23 = vadd.f32 %v2175_v31, %v754_v15 }
 0x14a   : > { %vm785_vm5 = vcmp.ge.f32.partialorder %v769_v52, 0.0  ;;  %v801_v57 = vmul.f32 0.01, %v769_v52  ;;  %v816_v0 = vsel %vm784_vm4, %v768_v47, %v800_v53  ;;  %v808_v32 = vmul.f32 0.01, %v776_v22 }
 0x14b   : > { %v819_v17 = vsel %vm787_vm7, %v771_v61, %v803_v9  ;;  %v809_v33 = vmul.f32 0.01, %v777_v23  ;;  %vm792_vm12 = vcmp.ge.f32.partialorder %v776_v22, 0.0  ;;  %vm793_vm13 = vcmp.ge.f32.partialorder %v777_v23, 0.0  ;;  %v2219_v53 = vld [vmem:[%s2408_s6] ss:$0 sm:$0xff] }
 0x14c   : > { %v817_v1 = vsel %vm785_vm5, %v769_v52, %v801_v57  ;;  %v863_v24 = vpack.c.bf16 %v819_v17, %v818_v16  ;;  %v778_v35 = vadd.f32 %v2175_v31, %v755_v30  ;;  %v822_v36 = vsel %vm790_vm10, %v774_v18, %v806_v28 }
 0x14d   : > { %v862_v8 = vpack.c.bf16 %v817_v1, %v816_v0  ;;  %v823_v37 = vsel %vm791_vm11, %v775_v19, %v807_v29  ;;  %v779_v38 = vadd.f32 %v2175_v31, %v756_v34  ;;  %v824_v39 = vsel %vm792_vm12, %v776_v22, %v808_v32  ;;  %v1856_v31 = vld [vmem:[%s2109_s23 + $0x38] sm:$0xff]  }
 0x14e   : > { %v825_v40 = vsel %vm793_vm13, %v777_v23, %v809_v33  ;;  %v865_v41 = vpack.c.bf16 %v823_v37, %v822_v36  ;;  %v810_v44 = vmul.f32 0.01, %v778_v35  ;;  %vm794_vm14 = vcmp.ge.f32.partialorder %v778_v35, 0.0  ;;  %1721 = vmatmul.mubr.bf16.gmra.mrb[8].mxu0 %v1854_v42 }
 0x14f   : > { %1684 = vmatprep.mubr.bf16.mxu1 %v862_v8  ;;  %v866_v43 = vpack.c.bf16 %v825_v40, %v824_v39  ;;  %v811_v45 = vmul.f32 0.01, %v779_v38  ;;  %vm795_vm15 = vcmp.ge.f32.partialorder %v779_v38, 0.0  ;;  %1724 = vmatprep.mubr.bf16.mxu0 %v1855_v46 }
 0x150   : > { %1685 = vmatmul.mubr.bf16.gmra.mrb[4].mxu1 %v863_v24  ;;  %v826_v47 = vsel %vm794_vm14, %v778_v35, %v810_v44 }
 0x151   : > { %1688 = vmatprep.mubr.bf16.mxu1 %v864_v27  ;;  %v827_v48 = vsel %vm795_vm15, %v779_v38, %v811_v45 }
 0x152   : > { %v867_v49 = vpack.c.bf16 %v827_v48, %v826_v47 }
 0x156   : > { %1725 = vmatmul.mubr.bf16.gmra.mrb[12].mxu0 %v1856_v31 }
 0x158   : > { %1689 = vmatmul.mubr.bf16.gmra.mrb[8].mxu1 %v865_v41 }
 0x159   : > { %1692 = vmatprep.mubr.bf16.mxu1 %v866_v43 }
 0x160   : > { %1693 = vmatmul.mubr.bf16.gmra.mrb[12].mxu1 %v867_v49 }
 0x211   : > { %v1714_v51 = vpop.f32.mrb[0].mxu0 }
 0x212   : > { %v1159_v55 = vpop.f32.mrb[1].mxu0 }
 0x213   : > { %v1715_v58 = vpop.f32.mrb[2].mxu0 }
 0x214   : > { %v1162_v61 = vpop.f32.mrb[3].mxu0 }
 0x219   : > { %v1718_v3 = vpop.f32.mrb[4].mxu0 }
 0x21a   : > { %v1175_v7 = vpop.f32.mrb[5].mxu0 }
 0x21b   : > { %v1682_v50 = vpop.f32.mrb[0].mxu1  ;;  %v1719_v10 = vpop.f32.mrb[6].mxu0 }
 0x21c   : > { %v966_v52 = vpop.f32.mrb[1].mxu1  ;;  %v1168_v54 = vadd.f32 %v1714_v51, %v1682_v50  ;;  %v1178_v13 = vpop.f32.mrb[7].mxu0 }
 0x21d   : > { %v1683_v56 = vpop.f32.mrb[2].mxu1  ;;  %v1160_v57 = vadd.f32 %v1159_v55, %v966_v52 }
 0x21e   : > { %v969_v59 = vpop.f32.mrb[3].mxu1  ;;  %v1171_v60 = vadd.f32 %v1715_v58, %v1683_v56  ;;  %v2222_v62 = vadd.f32 %v2219_v53, %v1168_v54 }
 0x21f   : > { %v1163_v63 = vadd.f32 %v1162_v61, %v969_v59  ;;  %v2225_v0 = vadd.f32 %v2219_v53, %v1160_v57 }
 0x220   : > { %1249 = vmax.xlane.f32.xlu1 %v2222_v62  ;;  %v2230_v2 = vadd.f32 %v2219_v53, %v1171_v60 }
 0x221   : > { %1245 = vmax.xlane.f32.xlu0 %v2225_v0  ;;  %v2233_v5 = vadd.f32 %v2219_v53, %v1163_v63  ;;  %v1722_v18 = vpop.f32.mrb[8].mxu0 }
 0x222   : > { %v1191_v22 = vpop.f32.mrb[9].mxu0 }
 0x223   : > { %v1686_v1 = vpop.f32.mrb[4].mxu1  ;;  %v1723_v26 = vpop.f32.mrb[10].mxu0 }
 0x224   : > { %v982_v4 = vpop.f32.mrb[5].mxu1  ;;  %v1184_v6 = vadd.f32 %v1718_v3, %v1686_v1  ;;  %1251 = vmax.xlane.f32.xlu1 %v2230_v2  ;;  %v1194_v29 = vpop.f32.mrb[11].mxu0 }
 0x225   : > { %v1687_v8 = vpop.f32.mrb[6].mxu1  ;;  %v1176_v9 = vadd.f32 %v1175_v7, %v982_v4  ;;  %1247 = vmax.xlane.f32.xlu0 %v2233_v5 }
 0x226   : > { %v985_v11 = vpop.f32.mrb[7].mxu1  ;;  %v1187_v12 = vadd.f32 %v1719_v10, %v1687_v8  ;;  %v2238_v14 = vadd.f32 %v2219_v53, %v1184_v6 }
 0x227   : > { %v1179_v15 = vadd.f32 %v1178_v13, %v985_v11  ;;  %v2246_v20 = vadd.f32 %v2219_v53, %v1176_v9 }
 0x228   : > { %v2241_v16 = vadd.f32 %v2219_v53, %v1187_v12 }
 0x229   : > { %1257 = vmax.xlane.f32.xlu0 %v2238_v14  ;;  %v2249_v24 = vadd.f32 %v2219_v53, %v1179_v15  ;;  %v1726_v35 = vpop.f32.mrb[12].mxu0 }
 0x22a   : > { %1259 = vmax.xlane.f32.xlu1 %v2241_v16  ;;  %v1207_v39 = vpop.f32.mrb[13].mxu0 }
 0x22b   : > { %v1690_v17 = vpop.f32.mrb[8].mxu1  ;;  %v1727_v43 = vpop.f32.mrb[14].mxu0 }
 0x22c   : > { %v998_v19 = vpop.f32.mrb[9].mxu1  ;;  %v1200_v21 = vadd.f32 %v1722_v18, %v1690_v17  ;;  %v1210_v46 = vpop.f32.mrb[15].mxu0 }
 0x22d   : > { %v1691_v23 = vpop.f32.mrb[10].mxu1  ;;  %v1192_v25 = vadd.f32 %v1191_v22, %v998_v19  ;;  %1253 = vmax.xlane.f32.xlu0 %v2246_v20 }
 0x22e   : > { %v1001_v27 = vpop.f32.mrb[11].mxu1  ;;  %v1203_v28 = vadd.f32 %v1723_v26, %v1691_v23  ;;  %1255 = vmax.xlane.f32.xlu1 %v2249_v24  ;;  %v2254_v30 = vadd.f32 %v2219_v53, %v1200_v21 }
 0x22f   : > { %v1195_v32 = vadd.f32 %v1194_v29, %v1001_v27  ;;  %v2262_v37 = vadd.f32 %v2219_v53, %v1192_v25 }
 0x230   : > { %v2257_v33 = vadd.f32 %v2219_v53, %v1203_v28 }
 0x231   : > { %1265 = vmax.xlane.f32.xlu0 %v2254_v30  ;;  %v2265_v41 = vadd.f32 %v2219_v53, %v1195_v32 }
 0x232   : > { %1267 = vmax.xlane.f32.xlu1 %v2257_v33 }
 0x233   : > { %v1694_v34 = vpop.f32.mrb[12].mxu1 }
 0x234   : > { %v1014_v36 = vpop.f32.mrb[13].mxu1  ;;  %v1216_v38 = vadd.f32 %v1726_v35, %v1694_v34 }
 0x235   : > { %v1695_v40 = vpop.f32.mrb[14].mxu1  ;;  %v1208_v42 = vadd.f32 %v1207_v39, %v1014_v36  ;;  %1261 = vmax.xlane.f32.xlu0 %v2262_v37 }
 0x236   : > { %v1017_v44 = vpop.f32.mrb[15].mxu1  ;;  %v1219_v45 = vadd.f32 %v1727_v43, %v1695_v40  ;;  %1263 = vmax.xlane.f32.xlu1 %v2265_v41  ;;  %v2278_v31 = vadd.f32 %v2219_v53, %v1216_v38 }
 0x237   : > { %v1211_v47 = vadd.f32 %v1210_v46, %v1017_v44  ;;  %v2270_v48 = vadd.f32 %v2219_v53, %v1208_v42 }
 0x238   : > { %v2282_v50 = vadd.f32 %v2219_v53, %v1219_v45 }
 0x239   : > { %1269 = vmax.xlane.f32.xlu0 %v2270_v48  ;;  %v2274_v49 = vadd.f32 %v2219_v53, %v1211_v47 }
 0x23b   : > { %1271 = vmax.xlane.f32.xlu1 %v2274_v49 }
 0x23d   : > { %1273 = vmax.xlane.f32.xlu0 %v2278_v31 }
 0x23f   : > { %1275 = vmax.xlane.f32.xlu1 %v2282_v50 }
 0x2ad   : > { %v1250_v51 = vpop.xlane.xlu1 %1249 }
 0x2ae   : > { %v2286_v52 = vsub.f32 %v2222_v62, %v1250_v51  ;;  %v1246_v54 = vpop.xlane.xlu0 %1245 }
 0x2af   : > { %v2289_v55 = vsub.f32 %v2225_v0, %v1246_v54 }
 0x2b0   : > { %v1297_v56 = vmul.f32 1.442695, %v2286_v52 }
 0x2b1   : > { %v1293_v57 = vmul.f32 1.442695, %v2289_v55  ;;  %v1252_v58 = vpop.xlane.xlu1 %1251 }
 0x2b2   : > { %1857 = vpow2.f32 %v1297_v56  ;;  %v2294_v59 = vsub.f32 %v2230_v2, %v1252_v58  ;;  %v1248_v53 = vpop.xlane.xlu0 %1247 }
 0x2b3   : > { %v2297_v60 = vsub.f32 %v2233_v5, %v1248_v53  ;;  %1859 = vpow2.f32 %v1293_v57 }
 0x2b4   : > { %v1299_v61 = vmul.f32 1.442695, %v2294_v59 }
 0x2b5   : > { %v1295_v62 = vmul.f32 1.442695, %v2297_v60 }
 0x2b6   : > { %1861 = vpow2.f32 %v1299_v61  ;;  %v1258_v63 = vpop.xlane.xlu0 %1257 }
 0x2b7   : > { %v2302_v0 = vsub.f32 %v2238_v14, %v1258_v63  ;;  %v1260_v1 = vpop.xlane.xlu1 %1259  ;;  %1863 = vpow2.f32 %v1295_v62 }
 0x2b8   : > { %v2305_v3 = vsub.f32 %v2241_v16, %v1260_v1 }
 0x2b9   : > { %v1305_v2 = vmul.f32 1.442695, %v2302_v0 }
 0x2ba   : > { %v1307_v4 = vmul.f32 1.442695, %v2305_v3  ;;  %v1254_v5 = vpop.xlane.xlu0 %1253 }
 0x2bb   : > { %1865 = vpow2.f32 %v1305_v2  ;;  %v2310_v6 = vsub.f32 %v2246_v20, %v1254_v5  ;;  %v1256_v7 = vpop.xlane.xlu1 %1255 }
 0x2bc   : > { %v1858_v8 = vpop.eup %1857  ;;  %v2313_v9 = vsub.f32 %v2249_v24, %v1256_v7  ;;  %1867 = vpow2.f32 %v1307_v4 }
 0x2bd   : > { %v1301_v10 = vmul.f32 1.442695, %v2310_v6  ;;  %1329 = vadd.xlane.f32.xlu0 %v1858_v8  ;;  %v1860_v13 = vpop.eup %1859 }
 0x2be   : > { %v1303_v11 = vmul.f32 1.442695, %v2313_v9  ;;  %v1266_v12 = vpop.xlane.xlu0 %1265 }
 0x2bf   : > { %1869 = vpow2.f32 %v1301_v10  ;;  %v2318_v14 = vsub.f32 %v2254_v30, %v1266_v12  ;;  %v1268_v15 = vpop.xlane.xlu1 %1267 }
 0x2c0   : > { %v1862_v16 = vpop.eup %1861  ;;  %v2321_v17 = vsub.f32 %v2257_v33, %v1268_v15  ;;  %1871 = vpow2.f32 %v1303_v11 }
 0x2c1   : > { %v1313_v18 = vmul.f32 1.442695, %v2318_v14  ;;  %1325 = vadd.xlane.f32.xlu0 %v1860_v13  ;;  %1331 = vadd.xlane.f32.xlu1 %v1862_v16  ;;  %v1864_v23 = vpop.eup %1863 }
 0x2c2   : > { %v1315_v19 = vmul.f32 1.442695, %v2321_v17  ;;  %v1262_v20 = vpop.xlane.xlu0 %1261 }
 0x2c3   : > { %1873 = vpow2.f32 %v1313_v18  ;;  %v2326_v21 = vsub.f32 %v2262_v37, %v1262_v20  ;;  %v1264_v22 = vpop.xlane.xlu1 %1263 }
 0x2c4   : > { %v2329_v24 = vsub.f32 %v2265_v41, %v1264_v22  ;;  %1875 = vpow2.f32 %v1315_v19 }
 0x2c5   : > { %v1866_v25 = vpop.eup %1865  ;;  %v1309_v26 = vmul.f32 1.442695, %v2326_v21  ;;  %1327 = vadd.xlane.f32.xlu1 %v1864_v23 }
 0x2c6   : > { %v1311_v27 = vmul.f32 1.442695, %v2329_v24  ;;  %1337 = vadd.xlane.f32.xlu0 %v1866_v25  ;;  %v1270_v28 = vpop.xlane.xlu0 %1269  ;;  %v1868_v30 = vpop.eup %1867 }
 0x2c7   : > { %1877 = vpow2.f32 %v1309_v26  ;;  %v2334_v29 = vsub.f32 %v2270_v48, %v1270_v28 }
 0x2c8   : > { %v1272_v32 = vpop.xlane.xlu1 %1271  ;;  %1879 = vpow2.f32 %v1311_v27 }
 0x2c9   : > { %v1870_v33 = vpop.eup %1869  ;;  %v1317_v34 = vmul.f32 1.442695, %v2334_v29  ;;  %v2338_v35 = vsub.f32 %v2274_v49, %v1272_v32  ;;  %1339 = vadd.xlane.f32.xlu1 %v1868_v30 }
 0x2ca   : > { %1333 = vadd.xlane.f32.xlu0 %v1870_v33  ;;  %v1274_v36 = vpop.xlane.xlu0 %1273  ;;  %v1872_v39 = vpop.eup %1871 }
 0x2cb   : > { %1881 = vpow2.f32 %v1317_v34  ;;  %v1319_v37 = vmul.f32 1.442695, %v2338_v35  ;;  %v2342_v38 = vsub.f32 %v2278_v31, %v1274_v36 }
 0x2cc   : > { %v1276_v40 = vpop.xlane.xlu1 %1275 }
 0x2cd   : > { %v1874_v41 = vpop.eup %1873  ;;  %1883 = vpow2.f32 %v1319_v37  ;;  %v1321_v42 = vmul.f32 1.442695, %v2342_v38  ;;  %v2346_v43 = vsub.f32 %v2282_v50, %v1276_v40  ;;  %1335 = vadd.xlane.f32.xlu1 %v1872_v39 }
 0x2ce   : > { %1345 = vadd.xlane.f32.xlu0 %v1874_v41  ;;  %v1876_v45 = vpop.eup %1875 }
 0x2cf   : > { %1885 = vpow2.f32 %v1321_v42  ;;  %v1323_v44 = vmul.f32 1.442695, %v2346_v43 }
 0x2d1   : > { %v1878_v46 = vpop.eup %1877  ;;  %1887 = vpow2.f32 %v1323_v44  ;;  %1347 = vadd.xlane.f32.xlu1 %v1876_v45 }
 0x2d2   : > { %1341 = vadd.xlane.f32.xlu0 %v1878_v46  ;;  %v1880_v47 = vpop.eup %1879 }
 0x2d5   : > { %v1882_v48 = vpop.eup %1881  ;;  %1343 = vadd.xlane.f32.xlu1 %v1880_v47 }
 0x2d6   : > { %1349 = vadd.xlane.f32.xlu0 %v1882_v48 }
 0x2d7   : > { %v1884_v49 = vpop.eup %1883 }
 0x2d9   : > { %v1886_v31 = vpop.eup %1885  ;;  %1351 = vadd.xlane.f32.xlu1 %v1884_v49 }
 0x2da   : > { %1353 = vadd.xlane.f32.xlu0 %v1886_v31 }
 0x2db   : > { %v1888_v50 = vpop.eup %1887 }
 0x2dd   : > { %1355 = vadd.xlane.f32.xlu1 %v1888_v50 }
 0x34a   : > { %v1330_v51 = vpop.xlane.xlu0 %1329 }
 0x34b   : > { %1889 = vlog2.f32 %v1330_v51 }
 0x34e   : > { %v1326_v54 = vpop.xlane.xlu0 %1325  ;;  %v1332_v56 = vpop.xlane.xlu1 %1331 }
 0x34f   : > { %1891 = vlog2.f32 %v1326_v54 }
 0x350   : > { %1893 = vlog2.f32 %v1332_v56 }
 0x352   : > { %v1328_v57 = vpop.xlane.xlu1 %1327 }
 0x353   : > { %1895 = vlog2.f32 %v1328_v57  ;;  %v1338_v58 = vpop.xlane.xlu0 %1337 }
 0x354   : > { %1897 = vlog2.f32 %v1338_v58 }
 0x355   : > { %v1890_v53 = vpop.eup %1889 }
 0x356   : > { %v1362_v61 = vmul.f32 0.6931472, %v1890_v53  ;;  %v1340_v62 = vpop.xlane.xlu1 %1339 }
 0x357   : > { %1899 = vlog2.f32 %v1340_v62  ;;  %v1334_v63 = vpop.xlane.xlu0 %1333 }
 0x358   : > { %v1391_v1 = vsub.f32 %v2286_v52, %v1362_v61  ;;  %1901 = vlog2.f32 %v1334_v63 }
 0x359   : > { %v1892_v2 = vpop.eup %1891 }
 0x35a   : > { %v1894_v4 = vpop.eup %1893  ;;  %1407 = vst [vmem:[%s2114_s27 + $0x10] sm:$0xff] %v1391_v1  ;;  %v1358_v5 = vmul.f32 0.6931472, %v1892_v2  ;;  %v1336_v7 = vpop.xlane.xlu1 %1335 }
 0x35b   : > { %v1364_v8 = vmul.f32 0.6931472, %v1894_v4  ;;  %1903 = vlog2.f32 %v1336_v7  ;;  %v1346_v10 = vpop.xlane.xlu0 %1345 }
 0x35c   : > { %v1389_v11 = vsub.f32 %v2289_v55, %v1358_v5  ;;  %1905 = vlog2.f32 %v1346_v10 }
 0x35d   : > { %v1896_v12 = vpop.eup %1895  ;;  %v1392_v13 = vsub.f32 %v2294_v59, %v1364_v8 }
 0x35e   : > { %v1898_v15 = vpop.eup %1897  ;;  %1405 = vst [vmem:[%s2114_s27] sm:$0xff] %v1389_v11  ;;  %v1360_v52 = vmul.f32 0.6931472, %v1896_v12  ;;  %v1348_v16 = vpop.xlane.xlu1 %1347 }
 0x35f   : > { %1408 = vst [vmem:[%s2114_s27 + $0x18] sm:$0xff] %v1392_v13  ;;  %v1370_v18 = vmul.f32 0.6931472, %v1898_v15  ;;  %1907 = vlog2.f32 %v1348_v16  ;;  %v1342_v19 = vpop.xlane.xlu0 %1341 }
 0x360   : > { %v1390_v20 = vsub.f32 %v2297_v60, %v1360_v52  ;;  %1909 = vlog2.f32 %v1342_v19 }
 0x361   : > { %v1900_v22 = vpop.eup %1899  ;;  %v1395_v55 = vsub.f32 %v2302_v0, %v1370_v18 }
 0x362   : > { %v1902_v23 = vpop.eup %1901  ;;  %1406 = vst [vmem:[%s2114_s27 + $0x8] sm:$0xff] %v1390_v20  ;;  %v1372_v59 = vmul.f32 0.6931472, %v1900_v22  ;;  %v1344_v25 = vpop.xlane.xlu1 %1343 }
 0x363   : > { %1411 = vst [vmem:[%s2114_s27 + $0x30] sm:$0xff] %v1395_v55  ;;  %v1366_v26 = vmul.f32 0.6931472, %v1902_v23  ;;  %1911 = vlog2.f32 %v1344_v25  ;;  %v1350_v27 = vpop.xlane.xlu0 %1349 }
 0x364   : > { %v1396_v28 = vsub.f32 %v2305_v3, %v1372_v59  ;;  %1913 = vlog2.f32 %v1350_v27 }
 0x365   : > { %v1904_v30 = vpop.eup %1903  ;;  %v1393_v60 = vsub.f32 %v2310_v6, %v1366_v26 }
 0x366   : > { %v1906_v32 = vpop.eup %1905  ;;  %1412 = vst [vmem:[%s2114_s27 + $0x38] sm:$0xff] %v1396_v28  ;;  %v1368_v0 = vmul.f32 0.6931472, %v1904_v30  ;;  %v1352_v33 = vpop.xlane.xlu1 %1351 }
 0x367   : > { %1409 = vst [vmem:[%s2114_s27 + $0x20] sm:$0xff] %v1393_v60  ;;  %v1378_v34 = vmul.f32 0.6931472, %v1906_v32  ;;  %1915 = vlog2.f32 %v1352_v33  ;;  %v1354_v36 = vpop.xlane.xlu0 %1353 }
 0x368   : > { %v1394_v37 = vsub.f32 %v2313_v9, %v1368_v0  ;;  %1917 = vlog2.f32 %v1354_v36 }
 0x369   : > { %v1908_v3 = vpop.eup %1907  ;;  %v1399_v39 = vsub.f32 %v2318_v14, %v1378_v34 }
 0x36a   : > { %v1910_v40 = vpop.eup %1909  ;;  %1410 = vst [vmem:[%s2114_s27 + $0x28] sm:$0xff] %v1394_v37  ;;  %v1380_v6 = vmul.f32 0.6931472, %v1908_v3  ;;  %v1356_v41 = vpop.xlane.xlu1 %1355 }
 0x36b   : > { %1415 = vst [vmem:[%s2114_s27 + $0x50] sm:$0xff] %v1399_v39  ;;  %v1374_v42 = vmul.f32 0.6931472, %v1910_v40  ;;  %1919 = vlog2.f32 %v1356_v41 }
 0x36c   : > { %v1400_v44 = vsub.f32 %v2321_v17, %v1380_v6 }
 0x36d   : > { %v1912_v45 = vpop.eup %1911  ;;  %v1397_v46 = vsub.f32 %v2326_v21, %v1374_v42 }
 0x36e   : > { %v1914_v9 = vpop.eup %1913  ;;  %1416 = vst [vmem:[%s2114_s27 + $0x58] sm:$0xff] %v1400_v44  ;;  %v1376_v47 = vmul.f32 0.6931472, %v1912_v45 }
 0x36f   : > { %1413 = vst [vmem:[%s2114_s27 + $0x40] sm:$0xff] %v1397_v46  ;;  %v1382_v14 = vmul.f32 0.6931472, %v1914_v9 }
 0x370   : > { %v1398_v48 = vsub.f32 %v2329_v24, %v1376_v47 }
 0x371   : > { %v1916_v49 = vpop.eup %1915  ;;  %v1401_v31 = vsub.f32 %v2334_v29, %v1382_v14 }
 0x372   : > { %v1918_v50 = vpop.eup %1917  ;;  %1414 = vst [vmem:[%s2114_s27 + $0x48] sm:$0xff] %v1398_v48  ;;  %v1384_v51 = vmul.f32 0.6931472, %v1916_v49 }
 0x373   : > { %1417 = vst [vmem:[%s2114_s27 + $0x60] sm:$0xff] %v1401_v31  ;;  %v1386_v17 = vmul.f32 0.6931472, %v1918_v50 }
 0x374   : > { %v1402_v21 = vsub.f32 %v2338_v35, %v1384_v51 }
 0x375   : > { %v1920_v54 = vpop.eup %1919  ;;  %v1403_v56 = vsub.f32 %v2342_v38, %v1386_v17 }
 0x376   : > { %1418 = vst [vmem:[%s2114_s27 + $0x68] sm:$0xff] %v1402_v21  ;;  %v1388_v57 = vmul.f32 0.6931472, %v1920_v54 }
 0x377   : > { %1419 = vst [vmem:[%s2114_s27 + $0x70] sm:$0xff] %v1403_v56 }
 0x378   : > { %v1404_v58 = vsub.f32 %v2346_v43, %v1388_v57 }
 0x37a   : > { %1420 = vst [vmem:[%s2114_s27 + $0x78] sm:$0xff] %v1404_v58 }
 0x37b PF: > { %s17_s30 = sadd.s32 1, %s1975_s30   ;;  %s2412_s24 = smov %s1955_s25 }
 0x37c   : > { %p14_p0 = scmp.ge.s32.totalorder %s17_s30, 6   ;;  %s2413_s25 = smov %s2069_s14 }
 0x37d   : > { %s2414_s26 = smov %s1967_s28  ;;  %s2415_s27 = smov %s1971_s29 }
 0x37e   : > { %s2416_s28 = smov %s2419_s8  ;;  %s2417_s29 = smov %s2423_s9 }
 0x37f   :  { %16 = sbr.rel (!%p14_p0) target bundleno = 6 (0x6), region = 138 }

</bundles_post_ra>
